<compile_context>
chip_gen: v6e
topology: v6e:2x2x1
jax: 0.10.0
libtpu: 0.0.40
codegen_flags: <defaults>
</compile_context>

<pallas_src>
import functools

import jax
import jax.numpy as jnp
from jax import lax
from jax.experimental import pallas as pl
from jax.experimental.pallas import tpu as pltpu


# ---------------------------------------------------------------------------
# Mish with a single transcendental + approximate reciprocal.
#   mish(x) = x * tanh(softplus(x)) = x * ((1+e^x)^2 - 1) / ((1+e^x)^2 + 1)
# Stable form with t = exp(-|x|):
#   x >= 0 : ((1+t)^2 - t^2) / ((1+t)^2 + t^2)
#   x <  0 : ((1+t)^2 - 1  ) / ((1+t)^2 + 1  )
# ---------------------------------------------------------------------------
def _mish(x):
    t = jnp.exp(-jnp.abs(x))
    u = 1.0 + t
    u2 = u * u
    a = jnp.where(x >= 0.0, t * t, 1.0)
    return x * (u2 - a) * pl.reciprocal(u2 + a, approx=True)


# ---------------------------------------------------------------------------
# Fused per-image Bottleneck kernel (channel-major: C on sublanes, H*W on lanes).
#   x_ref    : (Cin,  H*W)     one image of x, f32
#   w1t_ref  : (Cmid, Cin)     1x1 conv weight, transposed, bf16
#   w2cat_ref: (9*Cout, Cmid)  3x3 taps stacked [(ky,kx) row-major] x Cout, bf16
#   s/b refs : (C, 1)          folded BN scale / shift, f32
#   o_ref    : (Cout, H*W)     conv2 output (already channel-major == NCHW)
# ---------------------------------------------------------------------------
def _bottleneck_kernel(x_ref, w1t_ref, w2cat_ref, s1_ref, b1_ref, s2_ref, b2_ref,
                       o_ref, *, img_h, img_w, cout):
    hw = img_h * img_w

    # --- BN1 + Mish prologue (f32 elementwise). ---
    x = x_ref[...].astype(jnp.float32)
    a1 = _mish(x * s1_ref[...] + b1_ref[...])

    # --- 1x1 conv: one MXU matmul (Cmid, Cin) @ (Cin, H*W), bf16 in / f32 acc. ---
    h = jnp.dot(w1t_ref[...], a1.astype(jnp.bfloat16),
                preferred_element_type=jnp.float32)

    # --- BN2 + Mish (f32). ---
    a2 = _mish(h * s2_ref[...] + b2_ref[...])

    # --- 3x3 "SAME" conv: ONE wide matmul, then roll/mask/sum nine small slices. ---
    # r[k*Cout + co, g] = sum_cm w2[ky, kx, cm, co] * a2[cm, g]
    r = jnp.dot(w2cat_ref[...], a2.astype(jnp.bfloat16),
                preferred_element_type=jnp.float32)

    # In-kernel boundary coordinates (no HBM mask array). Row checks use the flat
    # index directly; the column coordinate avoids integer division when W is a
    # power of two.
    idx = lax.broadcasted_iota(jnp.int32, (1, hw), 1)
    if (img_w & (img_w - 1)) == 0:
        col = idx & (img_w - 1)
    else:
        col = lax.rem(idx, img_w)

    acc = jnp.zeros((cout, hw), jnp.float32)
    k = 0
    for dy in (-1, 0, 1):
        for dx in (-1, 0, 1):
            rk = r[k * cout:(k + 1) * cout, :]          # (Cout, H*W), 8-aligned slice
            s = dy * img_w + dx
            if s == 0:
                acc = acc + rk
            else:
                # out[:, g] needs r_k[:, g + s]  ->  roll lanes by -s (wrap is masked).
                shifted = pltpu.roll(rk, shift=(-s) % hw, axis=1)
                ok = jnp.full((1, hw), True)
                if dy < 0:
                    ok = ok & (idx >= (-dy) * img_w)            # gh + dy >= 0
                if dy > 0:
                    ok = ok & (idx < (img_h - dy) * img_w)      # gh + dy <  H
                if dx < 0:
                    ok = ok & (col >= -dx)                      # gw + dx >= 0
                if dx > 0:
                    ok = ok & (col <= img_w - 1 - dx)           # gw + dx <  W
                acc = acc + jnp.where(ok, shifted, 0.0)
            k += 1

    o_ref[...] = acc.astype(o_ref.dtype)


# ---------------------------------------------------------------------------
# Bottleneck forward (NCHW in / NCHW out, like the PyTorch module).
# ---------------------------------------------------------------------------
def _fold_bn(gamma, beta, mean, var, eps):
    scale = gamma / jnp.sqrt(var + eps)
    shift = beta - mean * scale
    return scale.astype(jnp.float32), shift.astype(jnp.float32)


def bottleneck_forward(x_nchw, params, eps=1e-5):
    w1, w2 = params["w1"], params["w2"]          # (Cin, Cmid), (3, 3, Cmid, Cout)
    g1, b1, m1, v1 = params["bn1"]
    g2, b2, m2, v2 = params["bn2"]

    n, cin, h, w = x_nchw.shape
    cmid = w1.shape[1]
    cout = w2.shape[-1]
    hw = h * w

    s1, sh1 = _fold_bn(g1, b1, m1, v1, eps)
    s2, sh2 = _fold_bn(g2, b2, m2, v2, eps)

    # Channel-major everywhere: pure reshapes (no transposes / extra HBM passes).
    x3 = x_nchw.reshape(n, cin, hw)

    # Tiny host-side weight reshapes (done once; MXU operands in bf16).
    w1t = jnp.transpose(w1).astype(jnp.bfloat16)                        # (Cmid, Cin)
    w2cat = jnp.transpose(w2.reshape(9, cmid, cout), (0, 2, 1))         # (9, Cout, Cmid)
    w2cat = w2cat.reshape(9 * cout, cmid).astype(jnp.bfloat16)

    kernel = functools.partial(_bottleneck_kernel, img_h=h, img_w=w, cout=cout)

    out = pl.pallas_call(
        kernel,
        out_shape=jax.ShapeDtypeStruct((n, cout, hw), x_nchw.dtype),
        grid=(n,),
        in_specs=[
            pl.BlockSpec((None, cin, hw), lambda i: (i, 0, 0)),     # x image
            pl.BlockSpec((cmid, cin), lambda i: (0, 0)),            # w1^T (bf16)
            pl.BlockSpec((9 * cout, cmid), lambda i: (0, 0)),       # w2 concat (bf16)
            pl.BlockSpec((cin, 1), lambda i: (0, 0)),               # bn1 scale
            pl.BlockSpec((cin, 1), lambda i: (0, 0)),               # bn1 shift
            pl.BlockSpec((cmid, 1), lambda i: (0, 0)),              # bn2 scale
            pl.BlockSpec((cmid, 1), lambda i: (0, 0)),              # bn2 shift
        ],
        out_specs=pl.BlockSpec((None, cout, hw), lambda i: (i, 0, 0)),
        compiler_params=pltpu.CompilerParams(dimension_semantics=("parallel",)),
    )(x3, w1t, w2cat,
      s1.reshape(cin, 1), sh1.reshape(cin, 1),
      s2.reshape(cmid, 1), sh2.reshape(cmid, 1))

    out_nchw = out.reshape(n, cout, h, w)                           # already channel-major
    return jnp.concatenate([x_nchw, out_nchw], axis=1)


# ---------------------------------------------------------------------------
# Pure-JAX reference.
# ---------------------------------------------------------------------------
def _mish_ref(x):
    return x * jnp.tanh(jax.nn.softplus(x))


def bottleneck_ref(x_nchw, params, eps=1e-5):
    w1, w2 = params["w1"], params["w2"]
    g1, b1, m1, v1 = params["bn1"]
    g2, b2, m2, v2 = params["bn2"]
    x = jnp.transpose(x_nchw, (0, 2, 3, 1))                       # NHWC
    h1 = _mish_ref((x - m1) / jnp.sqrt(v1 + eps) * g1 + b1)
    h1 = jnp.einsum("nhwc,cd->nhwd", h1, w1)
    h1 = _mish_ref((h1 - m2) / jnp.sqrt(v2 + eps) * g2 + b2)
    out = lax.conv_general_dilated(
        h1, w2, window_strides=(1, 1), padding="SAME",
        dimension_numbers=("NHWC", "HWIO", "NHWC"))
    out = jnp.transpose(out, (0, 3, 1, 2))
    return jnp.concatenate([x_nchw, out], axis=1)


if __name__ == "__main__":
    key = jax.random.PRNGKey(0)
    ks = jax.random.split(key, 12)

    # Small DenseNet-style Bottleneck: nChannels=64, growthRate=32 -> interChannels=128.
    N, C, H, W = 2, 64, 16, 16
    growth = 32
    cmid = 4 * growth          # 128
    cout = growth              # 32

    x = jax.random.normal(ks[0], (N, C, H, W), jnp.float32) * 2.0

    params = {
        "w1": jax.random.normal(ks[1], (C, cmid), jnp.float32) / jnp.sqrt(C),
        "w2": jax.random.normal(ks[2], (3, 3, cmid, cout), jnp.float32) / jnp.sqrt(9 * cmid),
        "bn1": (1.0 + 0.1 * jax.random.normal(ks[3], (C,), jnp.float32),
                0.1 * jax.random.normal(ks[4], (C,), jnp.float32),
                0.1 * jax.random.normal(ks[5], (C,), jnp.float32),
                1.0 + 0.1 * jax.random.uniform(ks[6], (C,), jnp.float32)),
        "bn2": (1.0 + 0.1 * jax.random.normal(ks[7], (cmid,), jnp.float32),
                0.1 * jax.random.normal(ks[8], (cmid,), jnp.float32),
                0.1 * jax.random.normal(ks[9], (cmid,), jnp.float32),
                1.0 + 0.1 * jax.random.uniform(ks[10], (cmid,), jnp.float32)),
    }

    y = jax.block_until_ready(jax.jit(bottleneck_forward)(x, params))
    y_ref = jax.block_until_ready(bottleneck_ref(x, params))

    assert y.shape == (N, C + growth, H, W), y.shape
    err = float(jnp.max(jnp.abs(y - y_ref)) / (jnp.max(jnp.abs(y_ref)) + 1e-6))
    assert err < 2e-2, f"max relative error too large: {err}"

    print("KERNEL_OK")
</pallas_src>

<mosaic_0001>
module attributes {stable_mosaic.version = 11 : i64} {
  func.func @_bottleneck_kernel(%arg0: i32, %arg1: memref<1x64x256xf32, #tpu.memory_space<vmem>>, %arg2: memref<128x64xbf16, #tpu.memory_space<vmem>>, %arg3: memref<288x128xbf16, #tpu.memory_space<vmem>>, %arg4: memref<64x1xf32, #tpu.memory_space<vmem>>, %arg5: memref<64x1xf32, #tpu.memory_space<vmem>>, %arg6: memref<128x1xf32, #tpu.memory_space<vmem>>, %arg7: memref<128x1xf32, #tpu.memory_space<vmem>>, %arg8: memref<1x32x256xf32, #tpu.memory_space<vmem>>) attributes {dimension_semantics = [#tpu.dimension_semantics<parallel>], iteration_bounds = array<i64: 2>, scalar_prefetch = 0 : i64, scratch_operands = 0 : i64, tpu.core_type = #tpu.core_type<tc>, window_params = [{transform_indices = @transform_0, window_bounds = array<i64: 1, 64, 256>}, {pipeline_mode = #tpu.pipeline_mode<synchronous>, transform_indices = @transform_1, window_bounds = array<i64: 128, 64>}, {pipeline_mode = #tpu.pipeline_mode<synchronous>, transform_indices = @transform_2, window_bounds = array<i64: 288, 128>}, {pipeline_mode = #tpu.pipeline_mode<synchronous>, transform_indices = @transform_3, window_bounds = array<i64: 64, 1>}, {pipeline_mode = #tpu.pipeline_mode<synchronous>, transform_indices = @transform_4, window_bounds = array<i64: 64, 1>}, {pipeline_mode = #tpu.pipeline_mode<synchronous>, transform_indices = @transform_5, window_bounds = array<i64: 128, 1>}, {pipeline_mode = #tpu.pipeline_mode<synchronous>, transform_indices = @transform_6, window_bounds = array<i64: 128, 1>}, {transform_indices = @transform_7, window_bounds = array<i64: 1, 32, 256>}]} {
    %c0 = arith.constant 0 : index
    %c0_0 = arith.constant 0 : index
    %c0_1 = arith.constant 0 : index
    %0 = vector.load %arg1[%c0, %c0_0, %c0_1] : memref<1x64x256xf32, #tpu.memory_space<vmem>>, vector<1x64x256xf32>
    %1 = vector.shape_cast %0 : vector<1x64x256xf32> to vector<64x256xf32>
    %c0_2 = arith.constant 0 : index
    %c0_3 = arith.constant 0 : index
    %2 = vector.load %arg4[%c0_2, %c0_3] : memref<64x1xf32, #tpu.memory_space<vmem>>, vector<64x1xf32>
    %3 = vector.broadcast %2 : vector<64x1xf32> to vector<64x256xf32>
    %4 = arith.mulf %1, %3 : vector<64x256xf32>
    %c0_4 = arith.constant 0 : index
    %c0_5 = arith.constant 0 : index
    %5 = vector.load %arg5[%c0_4, %c0_5] : memref<64x1xf32, #tpu.memory_space<vmem>>, vector<64x1xf32>
    %6 = vector.broadcast %5 : vector<64x1xf32> to vector<64x256xf32>
    %7 = arith.addf %4, %6 : vector<64x256xf32>
    %8 = math.absf %7 : vector<64x256xf32>
    %cst = arith.constant 0.000000e+00 : f32
    %9 = vector.broadcast %cst : f32 to vector<64x256xf32>
    %10 = arith.subf %9, %8 : vector<64x256xf32>
    %11 = math.exp %10 : vector<64x256xf32>
    %cst_6 = arith.constant 1.000000e+00 : f32
    %12 = vector.broadcast %cst_6 : f32 to vector<64x256xf32>
    %13 = arith.addf %12, %11 : vector<64x256xf32>
    %14 = arith.mulf %13, %13 : vector<64x256xf32>
    %cst_7 = arith.constant 0.000000e+00 : f32
    %15 = vector.broadcast %cst_7 : f32 to vector<64x256xf32>
    %16 = arith.cmpf oge, %7, %15 : vector<64x256xf32>
    %17 = arith.mulf %11, %11 : vector<64x256xf32>
    %cst_8 = arith.constant 1.000000e+00 : f32
    %18 = vector.broadcast %cst_8 : f32 to vector<64x256xf32>
    %19 = arith.select %16, %17, %18 : vector<64x256xi1>, vector<64x256xf32>
    %20 = arith.subf %14, %19 : vector<64x256xf32>
    %21 = arith.mulf %7, %20 : vector<64x256xf32>
    %22 = arith.addf %14, %19 : vector<64x256xf32>
    %23 = tpu.reciprocal %22 {approx = true} : vector<64x256xf32> -> vector<64x256xf32>
    %24 = arith.mulf %21, %23 : vector<64x256xf32>
    %c0_9 = arith.constant 0 : index
    %c0_10 = arith.constant 0 : index
    %25 = vector.load %arg2[%c0_9, %c0_10] : memref<128x64xbf16, #tpu.memory_space<vmem>>, vector<128x64xbf16>
    %26 = arith.truncf %24 : vector<64x256xf32> to vector<64x256xbf16>
    %cst_11 = arith.constant dense<0.000000e+00> : vector<128x256xf32>
    %27 = tpu.matmul %25, %26, %cst_11 {dimension_numbers = #tpu.dot_dimension_numbers<[1], [0], [0], [1], [0, 0, 1, 1], [], []>} : vector<128x64xbf16>, vector<64x256xbf16>, vector<128x256xf32> -> vector<128x256xf32>
    %c0_12 = arith.constant 0 : index
    %c0_13 = arith.constant 0 : index
    %28 = vector.load %arg6[%c0_12, %c0_13] : memref<128x1xf32, #tpu.memory_space<vmem>>, vector<128x1xf32>
    %29 = vector.broadcast %28 : vector<128x1xf32> to vector<128x256xf32>
    %30 = arith.mulf %27, %29 : vector<128x256xf32>
    %c0_14 = arith.constant 0 : index
    %c0_15 = arith.constant 0 : index
    %31 = vector.load %arg7[%c0_14, %c0_15] : memref<128x1xf32, #tpu.memory_space<vmem>>, vector<128x1xf32>
    %32 = vector.broadcast %31 : vector<128x1xf32> to vector<128x256xf32>
    %33 = arith.addf %30, %32 : vector<128x256xf32>
    %34 = math.absf %33 : vector<128x256xf32>
    %cst_16 = arith.constant 0.000000e+00 : f32
    %35 = vector.broadcast %cst_16 : f32 to vector<128x256xf32>
    %36 = arith.subf %35, %34 : vector<128x256xf32>
    %37 = math.exp %36 : vector<128x256xf32>
    %cst_17 = arith.constant 1.000000e+00 : f32
    %38 = vector.broadcast %cst_17 : f32 to vector<128x256xf32>
    %39 = arith.addf %38, %37 : vector<128x256xf32>
    %40 = arith.mulf %39, %39 : vector<128x256xf32>
    %cst_18 = arith.constant 0.000000e+00 : f32
    %41 = vector.broadcast %cst_18 : f32 to vector<128x256xf32>
    %42 = arith.cmpf oge, %33, %41 : vector<128x256xf32>
    %43 = arith.mulf %37, %37 : vector<128x256xf32>
    %cst_19 = arith.constant 1.000000e+00 : f32
    %44 = vector.broadcast %cst_19 : f32 to vector<128x256xf32>
    %45 = arith.select %42, %43, %44 : vector<128x256xi1>, vector<128x256xf32>
    %46 = arith.subf %40, %45 : vector<128x256xf32>
    %47 = arith.mulf %33, %46 : vector<128x256xf32>
    %48 = arith.addf %40, %45 : vector<128x256xf32>
    %49 = tpu.reciprocal %48 {approx = true} : vector<128x256xf32> -> vector<128x256xf32>
    %50 = arith.mulf %47, %49 : vector<128x256xf32>
    %c0_20 = arith.constant 0 : index
    %c0_21 = arith.constant 0 : index
    %51 = vector.load %arg3[%c0_20, %c0_21] : memref<288x128xbf16, #tpu.memory_space<vmem>>, vector<288x128xbf16>
    %52 = arith.truncf %50 : vector<128x256xf32> to vector<128x256xbf16>
    %cst_22 = arith.constant dense<0.000000e+00> : vector<288x256xf32>
    %53 = tpu.matmul %51, %52, %cst_22 {dimension_numbers = #tpu.dot_dimension_numbers<[1], [0], [0], [1], [0, 0, 1, 1], [], []>} : vector<288x128xbf16>, vector<128x256xbf16>, vector<288x256xf32> -> vector<288x256xf32>
    %54 = tpu.iota {dimensions = array<i32: 1>} : vector<1x256xi32>
    %c15_i32 = arith.constant 15 : i32
    %55 = vector.broadcast %c15_i32 : i32 to vector<1x256xi32>
    %56 = arith.andi %54, %55 : vector<1x256xi32>
    %cst_23 = arith.constant 0.000000e+00 : f32
    %57 = vector.broadcast %cst_23 : f32 to vector<32x256xf32>
    %58 = vector.extract_strided_slice %53 {offsets = [0, 0], sizes = [32, 256], strides = [1, 1]} : vector<288x256xf32> to vector<32x256xf32>
    %c17_i32 = arith.constant 17 : i32
    %59 = tpu.dynamic_rotate %58 by %c17_i32 dim 1 : vector<32x256xf32>, i32 -> vector<32x256xf32>
    %true = arith.constant true
    %60 = vector.broadcast %true : i1 to vector<1x256xi1>
    %c16_i32 = arith.constant 16 : i32
    %61 = vector.broadcast %c16_i32 : i32 to vector<1x256xi32>
    %62 = arith.cmpi sge, %54, %61 : vector<1x256xi32>
    %63 = arith.andi %60, %62 : vector<1x256xi1>
    %c1_i32 = arith.constant 1 : i32
    %64 = vector.broadcast %c1_i32 : i32 to vector<1x256xi32>
    %65 = arith.cmpi sge, %56, %64 : vector<1x256xi32>
    %66 = arith.andi %63, %65 : vector<1x256xi1>
    %cst_24 = arith.constant 0.000000e+00 : f32
    %67 = vector.shape_cast %66 : vector<1x256xi1> to vector<1x256xi1>
    %68 = vector.broadcast %67 : vector<1x256xi1> to vector<32x256xi1>
    %69 = vector.broadcast %cst_24 : f32 to vector<32x256xf32>
    %70 = arith.select %68, %59, %69 : vector<32x256xi1>, vector<32x256xf32>
    %71 = arith.addf %57, %70 : vector<32x256xf32>
    %72 = vector.extract_strided_slice %53 {offsets = [32, 0], sizes = [32, 256], strides = [1, 1]} : vector<288x256xf32> to vector<32x256xf32>
    %c16_i32_25 = arith.constant 16 : i32
    %73 = tpu.dynamic_rotate %72 by %c16_i32_25 dim 1 : vector<32x256xf32>, i32 -> vector<32x256xf32>
    %true_26 = arith.constant true
    %74 = vector.broadcast %true_26 : i1 to vector<1x256xi1>
    %c16_i32_27 = arith.constant 16 : i32
    %75 = vector.broadcast %c16_i32_27 : i32 to vector<1x256xi32>
    %76 = arith.cmpi sge, %54, %75 : vector<1x256xi32>
    %77 = arith.andi %74, %76 : vector<1x256xi1>
    %cst_28 = arith.constant 0.000000e+00 : f32
    %78 = vector.shape_cast %77 : vector<1x256xi1> to vector<1x256xi1>
    %79 = vector.broadcast %78 : vector<1x256xi1> to vector<32x256xi1>
    %80 = vector.broadcast %cst_28 : f32 to vector<32x256xf32>
    %81 = arith.select %79, %73, %80 : vector<32x256xi1>, vector<32x256xf32>
    %82 = arith.addf %71, %81 : vector<32x256xf32>
    %83 = vector.extract_strided_slice %53 {offsets = [64, 0], sizes = [32, 256], strides = [1, 1]} : vector<288x256xf32> to vector<32x256xf32>
    %c15_i32_29 = arith.constant 15 : i32
    %84 = tpu.dynamic_rotate %83 by %c15_i32_29 dim 1 : vector<32x256xf32>, i32 -> vector<32x256xf32>
    %true_30 = arith.constant true
    %85 = vector.broadcast %true_30 : i1 to vector<1x256xi1>
    %c16_i32_31 = arith.constant 16 : i32
    %86 = vector.broadcast %c16_i32_31 : i32 to vector<1x256xi32>
    %87 = arith.cmpi sge, %54, %86 : vector<1x256xi32>
    %88 = arith.andi %85, %87 : vector<1x256xi1>
    %c14_i32 = arith.constant 14 : i32
    %89 = vector.broadcast %c14_i32 : i32 to vector<1x256xi32>
    %90 = arith.cmpi sle, %56, %89 : vector<1x256xi32>
    %91 = arith.andi %88, %90 : vector<1x256xi1>
    %cst_32 = arith.constant 0.000000e+00 : f32
    %92 = vector.shape_cast %91 : vector<1x256xi1> to vector<1x256xi1>
    %93 = vector.broadcast %92 : vector<1x256xi1> to vector<32x256xi1>
    %94 = vector.broadcast %cst_32 : f32 to vector<32x256xf32>
    %95 = arith.select %93, %84, %94 : vector<32x256xi1>, vector<32x256xf32>
    %96 = arith.addf %82, %95 : vector<32x256xf32>
    %97 = vector.extract_strided_slice %53 {offsets = [96, 0], sizes = [32, 256], strides = [1, 1]} : vector<288x256xf32> to vector<32x256xf32>
    %c1_i32_33 = arith.constant 1 : i32
    %98 = tpu.dynamic_rotate %97 by %c1_i32_33 dim 1 : vector<32x256xf32>, i32 -> vector<32x256xf32>
    %true_34 = arith.constant true
    %99 = vector.broadcast %true_34 : i1 to vector<1x256xi1>
    %c1_i32_35 = arith.constant 1 : i32
    %100 = vector.broadcast %c1_i32_35 : i32 to vector<1x256xi32>
    %101 = arith.cmpi sge, %56, %100 : vector<1x256xi32>
    %102 = arith.andi %99, %101 : vector<1x256xi1>
    %cst_36 = arith.constant 0.000000e+00 : f32
    %103 = vector.shape_cast %102 : vector<1x256xi1> to vector<1x256xi1>
    %104 = vector.broadcast %103 : vector<1x256xi1> to vector<32x256xi1>
    %105 = vector.broadcast %cst_36 : f32 to vector<32x256xf32>
    %106 = arith.select %104, %98, %105 : vector<32x256xi1>, vector<32x256xf32>
    %107 = arith.addf %96, %106 : vector<32x256xf32>
    %108 = vector.extract_strided_slice %53 {offsets = [128, 0], sizes = [32, 256], strides = [1, 1]} : vector<288x256xf32> to vector<32x256xf32>
    %109 = arith.addf %107, %108 : vector<32x256xf32>
    %110 = vector.extract_strided_slice %53 {offsets = [160, 0], sizes = [32, 256], strides = [1, 1]} : vector<288x256xf32> to vector<32x256xf32>
    %c255_i32 = arith.constant 255 : i32
    %111 = tpu.dynamic_rotate %110 by %c255_i32 dim 1 : vector<32x256xf32>, i32 -> vector<32x256xf32>
    %true_37 = arith.constant true
    %112 = vector.broadcast %true_37 : i1 to vector<1x256xi1>
    %c14_i32_38 = arith.constant 14 : i32
    %113 = vector.broadcast %c14_i32_38 : i32 to vector<1x256xi32>
    %114 = arith.cmpi sle, %56, %113 : vector<1x256xi32>
    %115 = arith.andi %112, %114 : vector<1x256xi1>
    %cst_39 = arith.constant 0.000000e+00 : f32
    %116 = vector.shape_cast %115 : vector<1x256xi1> to vector<1x256xi1>
    %117 = vector.broadcast %116 : vector<1x256xi1> to vector<32x256xi1>
    %118 = vector.broadcast %cst_39 : f32 to vector<32x256xf32>
    %119 = arith.select %117, %111, %118 : vector<32x256xi1>, vector<32x256xf32>
    %120 = arith.addf %109, %119 : vector<32x256xf32>
    %121 = vector.extract_strided_slice %53 {offsets = [192, 0], sizes = [32, 256], strides = [1, 1]} : vector<288x256xf32> to vector<32x256xf32>
    %c241_i32 = arith.constant 241 : i32
    %122 = tpu.dynamic_rotate %121 by %c241_i32 dim 1 : vector<32x256xf32>, i32 -> vector<32x256xf32>
    %true_40 = arith.constant true
    %123 = vector.broadcast %true_40 : i1 to vector<1x256xi1>
    %c240_i32 = arith.constant 240 : i32
    %124 = vector.broadcast %c240_i32 : i32 to vector<1x256xi32>
    %125 = arith.cmpi slt, %54, %124 : vector<1x256xi32>
    %126 = arith.andi %123, %125 : vector<1x256xi1>
    %c1_i32_41 = arith.constant 1 : i32
    %127 = vector.broadcast %c1_i32_41 : i32 to vector<1x256xi32>
    %128 = arith.cmpi sge, %56, %127 : vector<1x256xi32>
    %129 = arith.andi %126, %128 : vector<1x256xi1>
    %cst_42 = arith.constant 0.000000e+00 : f32
    %130 = vector.shape_cast %129 : vector<1x256xi1> to vector<1x256xi1>
    %131 = vector.broadcast %130 : vector<1x256xi1> to vector<32x256xi1>
    %132 = vector.broadcast %cst_42 : f32 to vector<32x256xf32>
    %133 = arith.select %131, %122, %132 : vector<32x256xi1>, vector<32x256xf32>
    %134 = arith.addf %120, %133 : vector<32x256xf32>
    %135 = vector.extract_strided_slice %53 {offsets = [224, 0], sizes = [32, 256], strides = [1, 1]} : vector<288x256xf32> to vector<32x256xf32>
    %c240_i32_43 = arith.constant 240 : i32
    %136 = tpu.dynamic_rotate %135 by %c240_i32_43 dim 1 : vector<32x256xf32>, i32 -> vector<32x256xf32>
    %true_44 = arith.constant true
    %137 = vector.broadcast %true_44 : i1 to vector<1x256xi1>
    %c240_i32_45 = arith.constant 240 : i32
    %138 = vector.broadcast %c240_i32_45 : i32 to vector<1x256xi32>
    %139 = arith.cmpi slt, %54, %138 : vector<1x256xi32>
    %140 = arith.andi %137, %139 : vector<1x256xi1>
    %cst_46 = arith.constant 0.000000e+00 : f32
    %141 = vector.shape_cast %140 : vector<1x256xi1> to vector<1x256xi1>
    %142 = vector.broadcast %141 : vector<1x256xi1> to vector<32x256xi1>
    %143 = vector.broadcast %cst_46 : f32 to vector<32x256xf32>
    %144 = arith.select %142, %136, %143 : vector<32x256xi1>, vector<32x256xf32>
    %145 = arith.addf %134, %144 : vector<32x256xf32>
    %146 = vector.extract_strided_slice %53 {offsets = [256, 0], sizes = [32, 256], strides = [1, 1]} : vector<288x256xf32> to vector<32x256xf32>
    %c239_i32 = arith.constant 239 : i32
    %147 = tpu.dynamic_rotate %146 by %c239_i32 dim 1 : vector<32x256xf32>, i32 -> vector<32x256xf32>
    %true_47 = arith.constant true
    %148 = vector.broadcast %true_47 : i1 to vector<1x256xi1>
    %c240_i32_48 = arith.constant 240 : i32
    %149 = vector.broadcast %c240_i32_48 : i32 to vector<1x256xi32>
    %150 = arith.cmpi slt, %54, %149 : vector<1x256xi32>
    %151 = arith.andi %148, %150 : vector<1x256xi1>
    %c14_i32_49 = arith.constant 14 : i32
    %152 = vector.broadcast %c14_i32_49 : i32 to vector<1x256xi32>
    %153 = arith.cmpi sle, %56, %152 : vector<1x256xi32>
    %154 = arith.andi %151, %153 : vector<1x256xi1>
    %cst_50 = arith.constant 0.000000e+00 : f32
    %155 = vector.shape_cast %154 : vector<1x256xi1> to vector<1x256xi1>
    %156 = vector.broadcast %155 : vector<1x256xi1> to vector<32x256xi1>
    %157 = vector.broadcast %cst_50 : f32 to vector<32x256xf32>
    %158 = arith.select %156, %147, %157 : vector<32x256xi1>, vector<32x256xf32>
    %159 = arith.addf %145, %158 : vector<32x256xf32>
    %c0_51 = arith.constant 0 : index
    %c0_52 = arith.constant 0 : index
    %c0_53 = arith.constant 0 : index
    %160 = vector.load %arg8[%c0_51, %c0_52, %c0_53] : memref<1x32x256xf32, #tpu.memory_space<vmem>>, vector<1x32x256xf32>
    %161 = vector.shape_cast %160 : vector<1x32x256xf32> to vector<32x256xf32>
    %162 = vector.shape_cast %159 : vector<32x256xf32> to vector<1x32x256xf32>
    tpu.vector_store %arg8[%c0_51, %c0_52, %c0_53], %162 {strides = array<i32>} : memref<1x32x256xf32, #tpu.memory_space<vmem>>, vector<1x32x256xf32>,
    return
  }
  func.func @transform_0(%arg0: i32) -> (i32, i32, i32) {
    %c0_i32 = arith.constant 0 : i32
    %c0_i32_0 = arith.constant 0 : i32
    %c0_i32_1 = arith.constant 0 : i32
    return %arg0, %c0_i32, %c0_i32_0 : i32, i32, i32
  }
  func.func @transform_1(%arg0: i32) -> (i32, i32) {
    %c0_i32 = arith.constant 0 : i32
    %c0_i32_0 = arith.constant 0 : i32
    %c0_i32_1 = arith.constant 0 : i32
    return %c0_i32, %c0_i32_0 : i32, i32
  }
  func.func @transform_2(%arg0: i32) -> (i32, i32) {
    %c0_i32 = arith.constant 0 : i32
    %c0_i32_0 = arith.constant 0 : i32
    %c0_i32_1 = arith.constant 0 : i32
    return %c0_i32, %c0_i32_0 : i32, i32
  }
  func.func @transform_3(%arg0: i32) -> (i32, i32) {
    %c0_i32 = arith.constant 0 : i32
    %c0_i32_0 = arith.constant 0 : i32
    %c0_i32_1 = arith.constant 0 : i32
    return %c0_i32, %c0_i32_0 : i32, i32
  }
  func.func @transform_4(%arg0: i32) -> (i32, i32) {
    %c0_i32 = arith.constant 0 : i32
    %c0_i32_0 = arith.constant 0 : i32
    %c0_i32_1 = arith.constant 0 : i32
    return %c0_i32, %c0_i32_0 : i32, i32
  }
  func.func @transform_5(%arg0: i32) -> (i32, i32) {
    %c0_i32 = arith.constant 0 : i32
    %c0_i32_0 = arith.constant 0 : i32
    %c0_i32_1 = arith.constant 0 : i32
    return %c0_i32, %c0_i32_0 : i32, i32
  }
  func.func @transform_6(%arg0: i32) -> (i32, i32) {
    %c0_i32 = arith.constant 0 : i32
    %c0_i32_0 = arith.constant 0 : i32
    %c0_i32_1 = arith.constant 0 : i32
    return %c0_i32, %c0_i32_0 : i32, i32
  }
  func.func @transform_7(%arg0: i32) -> (i32, i32, i32) {
    %c0_i32 = arith.constant 0 : i32
    %c0_i32_0 = arith.constant 0 : i32
    %c0_i32_1 = arith.constant 0 : i32
    return %arg0, %c0_i32, %c0_i32_0 : i32, i32, i32
  }
}

</mosaic_0001>

<bundles_post_ra>
// kernel: bottleneck_forward.1
= control target key start
LH: loop header
LB: loop body
LE: loop exit
PB: predicated region body
PF: predicated region fallthrough
CT: control target
= control target key end

     0   :  { %s2736_s24 = smov 0   ;;  %s4453_s0 = inlined_call_operand.vmem [shape: f32[2,64,256], index: 0, kind: input, shape index: {}]   ;;  %s4454_s1 = inlined_call_operand.vmem [shape: bf16[128,64], index: 1, kind: input, shape index: {}]   ;;  %s4455_s2 = inlined_call_operand.vmem [shape: bf16[288,128], index: 2, kind: input, shape index: {}]   ;;  %s4456_s3 = inlined_call_operand.vmem [shape: f32[64,1], index: 3, kind: input, shape index: {}]   ;;  %s4457_s4 = inlined_call_operand.vmem [shape: f32[64,1], index: 4, kind: input, shape index: {}]   ;;  %s4458_s5 = inlined_call_operand.vmem [shape: f32[128,1], index: 5, kind: input, shape index: {}]   ;;  %s4459_s6 = inlined_call_operand.vmem [shape: f32[128,1], index: 6, kind: input, shape index: {}]   ;;  %s4460_s7 = inlined_call_operand.vmem [shape: f32[2,32,256], index: 7, kind: output, shape index: {}]  }
   0x1 LB: > { %s2379_s25 = sadd.s32 4294967295, %s2685_s24   ;;  %p2383_p0 = scmp.ge.s32.totalorder %s2685_s24, 1  ;;  %s2685_s24 = sphi %s2736_s24, %s17_s24  }
   0x2   : > { %p237_p1 = scmp.lt.s32.totalorder %s2685_s24, 3 }
   0x4   : > { %p238_p2 = pnand %p2383_p0, %p237_p1 }
   0x6   : > { %241 = sbr.rel (%p238_p2) target bundleno = 1022 (0x3fe), region = 48 }
   0xb   : > { %v366_v0 = vld [vmem:[%s4457_s4 + $0x30] sm:$0xff]  ;;  %v4461_v2 = vmov 0   ;;  %v367_v3 = vld [vmem:[%s4457_s4 + $0x38] sm:$0xff]  ;;  %v301_v5 = vld [vmem:[%s4456_s3 + $0x28] sm:$0xff]  ;;  %p269_p3 = scmp.lt.s32.totalorder %s2379_s25, 1  ;;  %s2688_s8 = smov 17  }
   0xc   : > { %v302_v1 = vld [vmem:[%s4456_s3 + $0x30] sm:$0xff]  ;;  %2460 = vset.pattern.permute.xlu1 %v4461_v2  ;;  %2459 = vset.pattern.permute.xlu0 %v4461_v2  ;;  %v303_v4 = vld [vmem:[%s4456_s3 + $0x38] sm:$0xff]  ;;  %v300_v6 = vld [vmem:[%s4456_s3 + $0x20] sm:$0xff]  ;;  %s2689_s9 = smov 1   ;;  %s2690_s10 = smov 16  }
   0xd   : > { %400 = vperm.xlu1 %2460, %v366_v0   ;;  %336 = vperm.xlu0 %2459, %v302_v1   ;;  %v365_v7 = vld [vmem:[%s4457_s4 + $0x28] sm:$0xff]  ;;  %v364_v8 = vld [vmem:[%s4457_s4 + $0x20] sm:$0xff]  ;;  %v299_v9 = vld [vmem:[%s4456_s3 + $0x18] sm:$0xff]  ;;  %s4620_s25 = smov (!%p269_p3, %s2379_s25), 1  ;;  %s2691_s11 = smov 15  }
   0xe   : > { %769 = vmatprep.mubr.bf16.mxu0 %v4461_v2  ;;  %1806 = vmatprep.mubr.bf16.mxu1 %v4461_v2  ;;  %v298_v10 = vld [vmem:[%s4456_s3 + $0x10] sm:$0xff]  ;;  %v363_v11 = vld [vmem:[%s4457_s4 + $0x18] sm:$0xff]  ;;  %v297_v13 = vld [vmem:[%s4456_s3 + $0x8] sm:$0xff]  ;;  %s2424_s15 = sshll.u32 %s4620_s25, 7  ;;  %s2692_s12 = smov 127  }
   0xf   : > { %v362_v12 = vld [vmem:[%s4457_s4 + $0x10] sm:$0xff]  ;;  %v296_v14 = vld [vmem:[%s4456_s3] sm:$0xff]  ;;  %v361_v15 = vld [vmem:[%s4457_s4 + $0x8] sm:$0xff]  ;;  %s2902_s18 = scalar_lea.vmem %s4453_s0, %s2424_s15  ;;  %s2693_s13 = smov 113  }
  0x10   : > { %v360_v16 = vld [vmem:[%s4457_s4] sm:$0xff]  ;;  %v865_v17 = vld [vmem:[%s4458_s5 + $0x78] sm:$0xff]  ;;  %v864_v18 = vld [vmem:[%s4458_s5 + $0x70] sm:$0xff]  ;;  %s2694_s14 = smov 112   ;;  %s2695_s15 = smov 111  }
  0x11   : > { %405 = vperm.xlu1 %2460, %v367_v3   ;;  %341 = vperm.xlu0 %2459, %v303_v4   ;;  %v993_v19 = vld [vmem:[%s4459_s6 + $0x78] sm:$0xff]  ;;  %v992_v20 = vld [vmem:[%s4459_s6 + $0x70] sm:$0xff]  ;;  %v863_v21 = vld [vmem:[%s4458_s5 + $0x68] sm:$0xff]  ;;  %s2425_s16 = sshll.u32 %s4620_s25, 6 }
  0x12   : > { %v862_v22 = vld [vmem:[%s4458_s5 + $0x60] sm:$0xff]  ;;  %v991_v23 = vld [vmem:[%s4459_s6 + $0x68] sm:$0xff]  ;;  %v861_v25 = vld [vmem:[%s4458_s5 + $0x58] sm:$0xff] }
  0x13   : > { %v990_v24 = vld [vmem:[%s4459_s6 + $0x60] sm:$0xff]  ;;  %v860_v26 = vld [vmem:[%s4458_s5 + $0x50] sm:$0xff]  ;;  %v989_v27 = vld [vmem:[%s4459_s6 + $0x58] sm:$0xff] }
  0x14   : > { %v988_v28 = vld [vmem:[%s4459_s6 + $0x50] sm:$0xff]  ;;  %v859_v29 = vld [vmem:[%s4458_s5 + $0x48] sm:$0xff]  ;;  %v858_v30 = vld [vmem:[%s4458_s5 + $0x40] sm:$0xff] }
  0x15   : > { %331 = vperm.xlu1 %2460, %v301_v5   ;;  %326 = vperm.xlu0 %2459, %v300_v6   ;;  %v987_v31 = vld [vmem:[%s4459_s6 + $0x48] sm:$0xff]  ;;  %v986_v32 = vld [vmem:[%s4459_s6 + $0x40] sm:$0xff]  ;;  %v857_v33 = vld [vmem:[%s4458_s5 + $0x38] sm:$0xff] }
  0x16   : > { %v856_v34 = vld [vmem:[%s4458_s5 + $0x30] sm:$0xff]  ;;  %v985_v35 = vld [vmem:[%s4459_s6 + $0x38] sm:$0xff]  ;;  %v855_v37 = vld [vmem:[%s4458_s5 + $0x28] sm:$0xff] }
  0x17   : > { %v984_v36 = vld [vmem:[%s4459_s6 + $0x30] sm:$0xff]  ;;  %v854_v38 = vld [vmem:[%s4458_s5 + $0x20] sm:$0xff]  ;;  %v983_v39 = vld [vmem:[%s4459_s6 + $0x28] sm:$0xff] }
  0x18   : > { %v982_v40 = vld [vmem:[%s4459_s6 + $0x20] sm:$0xff]  ;;  %v853_v41 = vld [vmem:[%s4458_s5 + $0x18] sm:$0xff]  ;;  %v852_v42 = vld [vmem:[%s4458_s5 + $0x10] sm:$0xff] }
  0x19   : > { %395 = vperm.xlu1 %2460, %v365_v7   ;;  %390 = vperm.xlu0 %2459, %v364_v8   ;;  %v981_v43 = vld [vmem:[%s4459_s6 + $0x18] sm:$0xff]  ;;  %v980_v44 = vld [vmem:[%s4459_s6 + $0x10] sm:$0xff]  ;;  %v851_v45 = vld [vmem:[%s4458_s5 + $0x8] sm:$0xff] }
  0x1a   : > { %v850_v46 = vld [vmem:[%s4458_s5] sm:$0xff]  ;;  %v979_v47 = vld [vmem:[%s4459_s6 + $0x8] sm:$0xff]  ;;  %v295_v53 = vld [vmem:[%s2902_s18 + $0x78] sm:$0xff] }
  0x1b   : > { %v978_v48 = vld [vmem:[%s4459_s6] sm:$0xff]  ;;  %v293_v49 = vld [vmem:[%s2902_s18 + $0x68] sm:$0xff]  ;;  %v294_v60 = vld [vmem:[%s2902_s18 + $0x70] sm:$0xff] }
  0x1c   : > { %v292_v57 = vld [vmem:[%s2902_s18 + $0x60] sm:$0xff]  ;;  %v290_v0 = vld [vmem:[%s2902_s18 + $0x50] sm:$0xff]  ;;  %v291_v1 = vld [vmem:[%s2902_s18 + $0x58] sm:$0xff] }
  0x1d   : > { %321 = vperm.xlu1 %2460, %v299_v9   ;;  %316 = vperm.xlu0 %2459, %v298_v10   ;;  %v288_v4 = vld [vmem:[%s2902_s18 + $0x40] sm:$0xff]  ;;  %v289_v6 = vld [vmem:[%s2902_s18 + $0x48] sm:$0xff] }
  0x21   : > { %385 = vperm.xlu1 %2460, %v363_v11   ;;  %380 = vperm.xlu0 %2459, %v362_v12  }
  0x25   : > { %311 = vperm.xlu1 %2460, %v297_v13   ;;  %306 = vperm.xlu0 %2459, %v296_v14  }
  0x29   : > { %375 = vperm.xlu1 %2460, %v361_v15   ;;  %370 = vperm.xlu0 %2459, %v360_v16  }
  0x2d   : > { %943 = vperm.xlu1 %2460, %v865_v17   ;;  %938 = vperm.xlu0 %2459, %v864_v18  }
  0x31   : > { %1071 = vperm.xlu1 %2460, %v993_v19   ;;  %1066 = vperm.xlu0 %2459, %v992_v20  }
  0x35   : > { %933 = vperm.xlu1 %2460, %v863_v21   ;;  %928 = vperm.xlu0 %2459, %v862_v22   ;;  %v286_v22 = vld [vmem:[%s2902_s18 + $0x30] sm:$0xff] }
  0x39   : > { %1061 = vperm.xlu1 %2460, %v991_v23   ;;  %1056 = vperm.xlu0 %2459, %v990_v24  }
  0x3d   : > { %923 = vperm.xlu1 %2460, %v861_v25   ;;  %918 = vperm.xlu0 %2459, %v860_v26   ;;  %v287_v25 = vld [vmem:[%s2902_s18 + $0x38] sm:$0xff]  ;;  %v284_v26 = vld [vmem:[%s2902_s18 + $0x20] sm:$0xff] }
  0x41   : > { %1051 = vperm.xlu1 %2460, %v989_v27   ;;  %1046 = vperm.xlu0 %2459, %v988_v28  }
  0x45   : > { %913 = vperm.xlu1 %2460, %v859_v29   ;;  %908 = vperm.xlu0 %2459, %v858_v30  }
  0x49   : > { %1041 = vperm.xlu1 %2460, %v987_v31   ;;  %1036 = vperm.xlu0 %2459, %v986_v32   ;;  %v285_v32 = vld [vmem:[%s2902_s18 + $0x28] sm:$0xff] }
  0x4d   : > { %903 = vperm.xlu1 %2460, %v857_v33   ;;  %898 = vperm.xlu0 %2459, %v856_v34  }
  0x51   : > { %1031 = vperm.xlu1 %2460, %v985_v35   ;;  %1026 = vperm.xlu0 %2459, %v984_v36  }
  0x55   : > { %893 = vperm.xlu1 %2460, %v855_v37   ;;  %888 = vperm.xlu0 %2459, %v854_v38  }
  0x59   : > { %1021 = vperm.xlu1 %2460, %v983_v39   ;;  %1016 = vperm.xlu0 %2459, %v982_v40  }
  0x5d   : > { %883 = vperm.xlu1 %2460, %v853_v41   ;;  %878 = vperm.xlu0 %2459, %v852_v42  }
  0x61   : > { %1011 = vperm.xlu1 %2460, %v981_v43   ;;  %1006 = vperm.xlu0 %2459, %v980_v44  }
  0x65   : > { %873 = vperm.xlu1 %2460, %v851_v45   ;;  %868 = vperm.xlu0 %2459, %v850_v46  }
  0x69   : > { %1001 = vperm.xlu1 %2460, %v979_v47   ;;  %996 = vperm.xlu0 %2459, %v978_v48  }
  0x88   : > { %v401_v50 = vpop.permute.xlu1 %400  ;;  %v337_v51 = vpop.permute.xlu0 %336 }
  0x89   : > { %v357_v52 = vmul.f32 %v337_v51, %v293_v49  ;;  %v356_v61 = vmul.f32 %v337_v51, %v292_v57 }
  0x8b   : > { %v2906_v54 = vadd.f32 %v401_v50, %v357_v52  ;;  %v2917_v11 = vadd.f32 %v401_v50, %v356_v61 }
  0x8c   : > { %v406_v55 = vpop.permute.xlu1 %405  ;;  %v342_v56 = vpop.permute.xlu0 %341 }
  0x8d   : > { %v359_v58 = vmul.f32 %v342_v56, %v295_v53  ;;  %v437_v59 = vand.u32 2147483647, %v2906_v54  ;;  %v358_v5 = vmul.f32 %v342_v56, %v294_v60  ;;  %v436_v33 = vand.u32 2147483647, %v2917_v11 }
  0x8e   : > { %vm533_vm1 = vcmp.ge.f32.partialorder %v2906_v54, 0.0  ;;  %vm532_vm7 = vcmp.ge.f32.partialorder %v2917_v11, 0.0 }
  0x8f   : > { %v2911_v62 = vadd.f32 %v406_v55, %v359_v58  ;;  %v453_v7 = vsub.f32 0.0, %v437_v59  ;;  %v2920_v16 = vadd.f32 %v406_v55, %v358_v5  ;;  %v452_v53 = vsub.f32 0.0, %v436_v33  ;;  %v282_v58 = vld [vmem:[%s2902_s18 + $0x10] sm:$0xff] }
  0x90   : > { %v332_v63 = vpop.permute.xlu1 %331  ;;  %v327_v3 = vpop.permute.xlu0 %326 }
  0x91   : > { %v354_v8 = vmul.f32 %v332_v63, %v290_v0  ;;  %v355_v9 = vmul.f32 %v332_v63, %v291_v1  ;;  %v352_v10 = vmul.f32 %v327_v3, %v288_v4  ;;  %v439_v12 = vand.u32 2147483647, %v2911_v62  ;;  %v283_v0 = vld [vmem:[%s2902_s18 + $0x18] sm:$0xff] }
  0x92   : > { %v353_v13 = vmul.f32 %v327_v3, %v289_v6  ;;  %v482_v20 = vmul.f32 1.442695, %v453_v7  ;;  %v438_v34 = vand.u32 2147483647, %v2920_v16  ;;  %v480_v5 = vmul.f32 1.442695, %v452_v53 }
  0x93   : > { %v455_v27 = vsub.f32 0.0, %v439_v12  ;;  %vm535_vm3 = vcmp.ge.f32.partialorder %v2911_v62, 0.0  ;;  %vm534_vm8 = vcmp.ge.f32.partialorder %v2920_v16, 0.0 }
  0x94   : > { %v396_v14 = vpop.permute.xlu1 %395  ;;  %v391_v15 = vpop.permute.xlu0 %390  ;;  %2487 = vpow2.f32 %v482_v20  ;;  %v454_v59 = vsub.f32 0.0, %v438_v34 }
  0x95   : > { %v2922_v17 = vadd.f32 %v396_v14, %v354_v8  ;;  %v2924_v18 = vadd.f32 %v396_v14, %v355_v9  ;;  %v2926_v19 = vadd.f32 %v391_v15, %v352_v10  ;;  %v2928_v21 = vadd.f32 %v391_v15, %v353_v13  ;;  %v280_v8 = vld [vmem:[%s2902_s18] sm:$0xff]  ;;  %v281_v14 = vld [vmem:[%s2902_s18 + $0x8] sm:$0xff]  ;;  %s4378_s18 = scalar_lea.vmem %s4460_s7, %s2425_s16 }
  0x96   : > { %v486_v44 = vmul.f32 1.442695, %v455_v27  ;;  %v484_v15 = vmul.f32 1.442695, %v454_v59 }
  0x97   : > { %v434_v23 = vand.u32 2147483647, %v2922_v17  ;;  %v435_v24 = vand.u32 2147483647, %v2924_v18  ;;  %v432_v28 = vand.u32 2147483647, %v2926_v19 }
  0x98   : > { %v433_v29 = vand.u32 2147483647, %v2928_v21  ;;  %v322_v30 = vpop.permute.xlu1 %321  ;;  %v317_v31 = vpop.permute.xlu0 %316  ;;  %vm530_vm0 = vcmp.ge.f32.partialorder %v2922_v17, 0.0  ;;  %vm531_vm2 = vcmp.ge.f32.partialorder %v2924_v18, 0.0  ;;  %vm528_vm4 = vcmp.ge.f32.partialorder %v2926_v19, 0.0 }
  0x99   : > { %v450_v35 = vsub.f32 0.0, %v434_v23  ;;  %v451_v36 = vsub.f32 0.0, %v435_v24  ;;  %v448_v37 = vsub.f32 0.0, %v432_v28  ;;  %v350_v39 = vmul.f32 %v322_v30, %v286_v22 }
  0x9a   : > { %v449_v38 = vsub.f32 0.0, %v433_v29  ;;  %v351_v42 = vmul.f32 %v322_v30, %v287_v25  ;;  %v348_v43 = vmul.f32 %v317_v31, %v284_v26  ;;  %v349_v47 = vmul.f32 %v317_v31, %v285_v32 }
  0x9b   : > { %v476_v40 = vmul.f32 1.442695, %v450_v35  ;;  %v478_v41 = vmul.f32 1.442695, %v451_v36  ;;  %v472_v45 = vmul.f32 1.442695, %v448_v37 }
  0x9c   : > { %v474_v46 = vmul.f32 1.442695, %v449_v38  ;;  %v386_v48 = vpop.permute.xlu1 %385  ;;  %v381_v49 = vpop.permute.xlu0 %380  ;;  %vm529_vm5 = vcmp.ge.f32.partialorder %v2928_v21, 0.0 }
  0x9d   : > { %2489 = vpow2.f32 %v476_v40  ;;  %v2940_v50 = vadd.f32 %v386_v48, %v350_v39  ;;  %v2942_v51 = vadd.f32 %v386_v48, %v351_v42  ;;  %v2944_v52 = vadd.f32 %v381_v49, %v348_v43 }
  0x9e   : > { %2491 = vpow2.f32 %v478_v41  ;;  %v2946_v55 = vadd.f32 %v381_v49, %v349_v47 }
  0x9f   : > { %2493 = vpow2.f32 %v472_v45  ;;  %v430_v56 = vand.u32 2147483647, %v2940_v50  ;;  %v431_v57 = vand.u32 2147483647, %v2942_v51  ;;  %v428_v60 = vand.u32 2147483647, %v2944_v52 }
  0xa0   : > { %2495 = vpow2.f32 %v486_v44  ;;  %v429_v61 = vand.u32 2147483647, %v2946_v55  ;;  %v312_v63 = vpop.permute.xlu1 %311  ;;  %v307_v1 = vpop.permute.xlu0 %306  ;;  %vm527_vm6 = vcmp.ge.f32.partialorder %v2942_v51, 0.0  ;;  %vm526_vm9 = vcmp.ge.f32.partialorder %v2940_v50, 0.0 }
  0xa1   : > { %2497 = vpow2.f32 %v474_v46  ;;  %v446_v3 = vsub.f32 0.0, %v430_v56  ;;  %v447_v4 = vsub.f32 0.0, %v431_v57  ;;  %v444_v6 = vsub.f32 0.0, %v428_v60  ;;  %v2488_v29 = vpop.eup %2487 }
  0xa2   : > { %v445_v7 = vsub.f32 0.0, %v429_v61  ;;  %v346_v12 = vmul.f32 %v312_v63, %v282_v58  ;;  %v347_v13 = vmul.f32 %v312_v63, %v283_v0  ;;  %v344_v24 = vmul.f32 %v307_v1, %v280_v8 }
  0xa3   : > { %v468_v9 = vmul.f32 1.442695, %v446_v3  ;;  %v470_v10 = vmul.f32 1.442695, %v447_v4  ;;  %v464_v27 = vmul.f32 1.442695, %v444_v6  ;;  %v345_v28 = vmul.f32 %v307_v1, %v281_v14 }
  0xa4   : > { %v466_v20 = vmul.f32 1.442695, %v445_v7  ;;  %v376_v22 = vpop.permute.xlu1 %375  ;;  %v371_v23 = vpop.permute.xlu0 %370  ;;  %v501_v63 = vadd.f32 1.0, %v2488_v29  ;;  %v549_v7 = vmul.f32 %v2488_v29, %v2488_v29  ;;  %vm524_vm10 = vcmp.ge.f32.partialorder %v2944_v52, 0.0 }
  0xa5   : > { %2499 = vpow2.f32 %v468_v9  ;;  %v2956_v25 = vadd.f32 %v376_v22, %v346_v12  ;;  %v2958_v26 = vadd.f32 %v376_v22, %v347_v13  ;;  %v2962_v32 = vadd.f32 %v371_v23, %v344_v24 }
  0xa6   : > { %2501 = vpow2.f32 %v470_v10  ;;  %v2964_v33 = vadd.f32 %v371_v23, %v345_v28  ;;  %v2991_v22 = vmul.f32 %v501_v63, %v501_v63  ;;  %vm525_vm11 = vcmp.ge.f32.partialorder %v2946_v55, 0.0 }
  0xa7   : > { %2503 = vpow2.f32 %v480_v5  ;;  %v426_v30 = vand.u32 2147483647, %v2956_v25  ;;  %v427_v31 = vand.u32 2147483647, %v2958_v26  ;;  %v424_v41 = vand.u32 2147483647, %v2962_v32 }
  0xa8   : > { %2505 = vpow2.f32 %v466_v20  ;;  %v425_v46 = vand.u32 2147483647, %v2964_v33  ;;  %vm523_vm12 = vcmp.ge.f32.partialorder %v2958_v26, 0.0  ;;  %vm522_vm13 = vcmp.ge.f32.partialorder %v2956_v25, 0.0 }
  0xa9   : > { %2507 = vpow2.f32 %v484_v15  ;;  %v442_v34 = vsub.f32 0.0, %v426_v30  ;;  %v443_v35 = vsub.f32 0.0, %v427_v31  ;;  %v440_v59 = vsub.f32 0.0, %v424_v41 }
  0xaa   : > { %v2490_v36 = vpop.eup %2489  ;;  %2509 = vpow2.f32 %v464_v27  ;;  %v441_v61 = vsub.f32 0.0, %v425_v46  ;;  %vm520_vm14 = vcmp.ge.f32.partialorder %v2962_v32, 0.0  ;;  %vm521_vm15 = vcmp.ge.f32.partialorder %v2964_v33, 0.0 }
  0xab   : > { %v2492_v37 = vpop.eup %2491  ;;  %v498_v38 = vadd.f32 1.0, %v2490_v36  ;;  %v546_v39 = vmul.f32 %v2490_v36, %v2490_v36  ;;  %v460_v40 = vmul.f32 1.442695, %v442_v34  ;;  %v462_v45 = vmul.f32 1.442695, %v443_v35 }
  0xac   : > { %v2494_v42 = vpop.eup %2493  ;;  %v499_v43 = vadd.f32 1.0, %v2492_v37  ;;  %v547_v44 = vmul.f32 %v2492_v37, %v2492_v37  ;;  %v456_v10 = vmul.f32 1.442695, %v440_v59  ;;  %v458_v20 = vmul.f32 1.442695, %v441_v61 }
  0xad   : > { %v2496_v47 = vpop.eup %2495  ;;  %v2968_v48 = vmul.f32 %v498_v38, %v498_v38  ;;  %v2975_v56 = vsel %vm530_vm0, %v546_v39, 1.0  ;;  %v496_v58 = vadd.f32 1.0, %v2494_v42  ;;  %2511 = vpow2.f32 %v460_v40 }
  0xae   : > { %v2498_v49 = vpop.eup %2497  ;;  %v2972_v53 = vmul.f32 %v499_v43, %v499_v43  ;;  %v2978_v57 = vsel %vm531_vm2, %v547_v44, 1.0  ;;  %v544_v60 = vmul.f32 %v2494_v42, %v2494_v42  ;;  %2513 = vpow2.f32 %v462_v45 }
  0xaf   : > { %v610_v0 = vadd.f32 %v2975_v56, %v2968_v48  ;;  %v497_v1 = vadd.f32 1.0, %v2498_v49  ;;  %v503_v3 = vadd.f32 1.0, %v2496_v47  ;;  %v545_v6 = vmul.f32 %v2498_v49, %v2498_v49 }
  0xb0   : > { %v611_v5 = vadd.f32 %v2978_v57, %v2972_v53  ;;  %v2986_v9 = vmul.f32 %v496_v58, %v496_v58  ;;  %v551_v12 = vmul.f32 %v2496_v47, %v2496_v47  ;;  %v2989_v14 = vsel %vm528_vm4, %v544_v60, 1.0 }
  0xb1   : > { %2515 = vrcp.f32 %v610_v0  ;;  %v2994_v24 = vmul.f32 %v497_v1, %v497_v1  ;;  %v2996_v28 = vmul.f32 %v503_v3, %v503_v3  ;;  %v3001_v30 = vsel %vm529_vm5, %v545_v6, 1.0 }
  0xb2   : > { %v2500_v4 = vpop.eup %2499  ;;  %2517 = vrcp.f32 %v611_v5  ;;  %v3006_v34 = vsel %vm533_vm1, %v549_v7, 1.0  ;;  %v608_v36 = vadd.f32 %v2989_v14, %v2986_v9  ;;  %v3014_v37 = vsel %vm535_vm3, %v551_v12, 1.0 }
  0xb3   : > { %v2502_v8 = vpop.eup %2501  ;;  %v494_v31 = vadd.f32 1.0, %v2500_v4  ;;  %2519 = vpow2.f32 %v456_v10  ;;  %v609_v41 = vadd.f32 %v3001_v30, %v2994_v24  ;;  %v542_v42 = vmul.f32 %v2500_v4, %v2500_v4 }
  0xb4   : > { %v2504_v13 = vpop.eup %2503  ;;  %v495_v15 = vadd.f32 1.0, %v2502_v8  ;;  %v543_v27 = vmul.f32 %v2502_v8, %v2502_v8  ;;  %2521 = vpow2.f32 %v458_v20  ;;  %v613_v44 = vadd.f32 %v3006_v34, %v2991_v22 }
  0xb5   : > { %v2506_v23 = vpop.eup %2505  ;;  %v3027_v45 = vmul.f32 %v494_v31, %v494_v31  ;;  %v615_v46 = vadd.f32 %v3014_v37, %v2996_v28  ;;  %v500_v47 = vadd.f32 1.0, %v2504_v13  ;;  %v548_v60 = vmul.f32 %v2504_v13, %v2504_v13 }
  0xb6   : > { %v2508_v29 = vpop.eup %2507  ;;  %v3016_v38 = vmul.f32 %v495_v15, %v495_v15  ;;  %v493_v39 = vadd.f32 1.0, %v2506_v23  ;;  %v541_v40 = vmul.f32 %v2506_v23, %v2506_v23  ;;  %v3023_v43 = vsel %vm527_vm6, %v543_v27, 1.0 }
  0xb7   : > { %v2510_v35 = vpop.eup %2509  ;;  %v502_v49 = vadd.f32 1.0, %v2508_v29  ;;  %v550_v61 = vmul.f32 %v2508_v29, %v2508_v29  ;;  %v3039_v4 = vmul.f32 %v500_v47, %v500_v47  ;;  %2523 = vrcp.f32 %v613_v44 }
  0xb8   : > { %v492_v58 = vadd.f32 1.0, %v2510_v35  ;;  %v540_v59 = vmul.f32 %v2510_v35, %v2510_v35  ;;  %v607_v0 = vadd.f32 %v3023_v43, %v3016_v38  ;;  %v3033_v1 = vmul.f32 %v493_v39, %v493_v39 }
  0xb9   : > { %v3037_v3 = vsel %vm525_vm11, %v541_v40, 1.0  ;;  %v3041_v7 = vmul.f32 %v502_v49, %v502_v49  ;;  %v3045_v8 = vsel %vm532_vm7, %v548_v60, 1.0  ;;  %2525 = vrcp.f32 %v615_v46 }
  0xba   : > { %v2512_v63 = vpop.eup %2511  ;;  %v3049_v13 = vsel %vm534_vm8, %v550_v61, 1.0  ;;  %2527 = vrcp.f32 %v609_v41  ;;  %v3053_v15 = vsel %vm526_vm9, %v542_v42, 1.0  ;;  %v3055_v20 = vmul.f32 %v492_v58, %v492_v58 }
  0xbb   : > { %v2514_v5 = vpop.eup %2513  ;;  %v490_v6 = vadd.f32 1.0, %v2512_v63  ;;  %v538_v23 = vmul.f32 %v2512_v63, %v2512_v63  ;;  %v3059_v27 = vsel %vm524_vm10, %v540_v59, 1.0  ;;  %v605_v29 = vadd.f32 %v3037_v3, %v3033_v1 }
  0xbc   : > { %v491_v10 = vadd.f32 1.0, %v2514_v5  ;;  %v539_v12 = vmul.f32 %v2514_v5, %v2514_v5  ;;  %v612_v35 = vadd.f32 %v3045_v8, %v3039_v4  ;;  %2529 = vrcp.f32 %v608_v36 }
  0xbd   : > { %v614_v40 = vadd.f32 %v3049_v13, %v3041_v7  ;;  %v606_v42 = vadd.f32 %v3053_v15, %v3027_v45  ;;  %2531 = vrcp.f32 %v607_v0  ;;  %v3077_v44 = vmul.f32 %v490_v6, %v490_v6 }
  0xbe   : > { %v3063_v31 = vmul.f32 %v491_v10, %v491_v10  ;;  %v3069_v39 = vsel %vm523_vm12, %v539_v12, 1.0  ;;  %v3073_v41 = vpop.eup %2515  ;;  %v604_v36 = vadd.f32 %v3059_v27, %v3055_v20  ;;  %v3082_v47 = vsel %vm522_vm13, %v538_v23, 1.0 }
  0xbf   : > { %v2518_v46 = vpop.eup %2517  ;;  %2533 = vrcp.f32 %v612_v35  ;;  %v581_v59 = vsub.f32 %v2991_v22, %v3006_v34  ;;  %v583_v0 = vsub.f32 %v2996_v28, %v3014_v37  ;;  %v602_v5 = vadd.f32 %v3082_v47, %v3077_v44 }
  0xc0   : > { %v2520_v49 = vpop.eup %2519  ;;  %2535 = vrcp.f32 %v605_v29  ;;  %v603_v58 = vadd.f32 %v3069_v39, %v3063_v31  ;;  %v577_v29 = vsub.f32 %v2994_v24, %v3001_v30  ;;  %v582_v24 = vsub.f32 %v3041_v7, %v3049_v13 }
  0xc1   : > { %v2522_v60 = vpop.eup %2521  ;;  %v488_v61 = vadd.f32 1.0, %v2520_v49  ;;  %v536_v63 = vmul.f32 %v2520_v49, %v2520_v49  ;;  %2537 = vrcp.f32 %v614_v40  ;;  %v597_v37 = vmul.f32 %v581_v59, %v2906_v54 }
  0xc2   : > { %2539 = vrcp.f32 %v606_v42  ;;  %v489_v6 = vadd.f32 1.0, %v2522_v60  ;;  %v537_v10 = vmul.f32 %v2522_v60, %v2522_v60  ;;  %v599_v42 = vmul.f32 %v583_v0, %v2911_v62 }
  0xc3   : > { %2541 = vrcp.f32 %v604_v36  ;;  %v3093_v12 = vmul.f32 %v488_v61, %v488_v61  ;;  %v3096_v23 = vsel %vm520_vm14, %v536_v63, 1.0  ;;  %v579_v36 = vsub.f32 %v2972_v53, %v2978_v57 }
  0xc4   : > { %2543 = vrcp.f32 %v603_v58  ;;  %v3098_v22 = vmul.f32 %v489_v6, %v489_v6  ;;  %v3100_v34 = vsel %vm521_vm15, %v537_v10, 1.0  ;;  %v2524_v35 = vpop.eup %2523  ;;  %v580_v58 = vsub.f32 %v3039_v4, %v3045_v8 }
  0xc5   : > { %v600_v28 = vadd.f32 %v3096_v23, %v3093_v12  ;;  %2545 = vrcp.f32 %v602_v5  ;;  %v645_v54 = vmul.f32 %v2524_v35, %v597_v37  ;;  %v593_v30 = vmul.f32 %v577_v29, %v2928_v21 }
  0xc6   : > { %v601_v40 = vadd.f32 %v3100_v34, %v3098_v22  ;;  %v2526_v49 = vpop.eup %2525  ;;  %v576_v62 = vsub.f32 %v2986_v9, %v2989_v14  ;;  %v578_v53 = vsub.f32 %v2968_v48, %v2975_v56  ;;  %v595_v63 = vmul.f32 %v579_v36, %v2924_v18 }
  0xc7   : > { %2547 = vrcp.f32 %v600_v28  ;;  %v2528_v60 = vpop.eup %2527  ;;  %v647_v59 = vmul.f32 %v2526_v49, %v599_v42  ;;  %v573_v4 = vsub.f32 %v3033_v1, %v3037_v3  ;;  %v575_v8 = vsub.f32 %v3016_v38, %v3023_v43 }
  0xc8   : > { %2549 = vrcp.f32 %v601_v40  ;;  %v596_v21 = vmul.f32 %v580_v58, %v2917_v11  ;;  %v598_v9 = vmul.f32 %v582_v24, %v2920_v16  ;;  %v641_v14 = vmul.f32 %v2528_v60, %v593_v30  ;;  %v2466_v24 = vld [vmem:[%s4454_s1 + $0x28] sm:$0xff]   ;;  %v2467_v30 = vld [vmem:[%s4454_s1 + $0x30] sm:$0xff]  }
  0xc9   : > { %v2530_v57 = vpop.eup %2529  ;;  %v671_v61 = vpack.c.bf16 %v647_v59, %v645_v54  ;;  %v643_v13 = vmul.f32 %v2518_v46, %v595_v63  ;;  %v592_v56 = vmul.f32 %v576_v62, %v2926_v19  ;;  %v594_v18 = vmul.f32 %v578_v53, %v2922_v17  ;;  %v2464_v54 = vld [vmem:[%s4454_s1 + $0x18] sm:$0xff]   ;;  %v2465_v59 = vld [vmem:[%s4454_s1 + $0x20] sm:$0xff]   ;;  %v3191_v53 = vpop.permute.xlu0 %938 }
  0xca   : > { %v2532_v0 = vpop.eup %2531  ;;  %v572_v1 = vsub.f32 %v3055_v20, %v3059_v27  ;;  %v574_v38 = vsub.f32 %v3027_v45, %v3053_v15  ;;  %v570_v3 = vsub.f32 %v3077_v44, %v3082_v47  ;;  %v571_v11 = vsub.f32 %v3063_v31, %v3069_v39  ;;  %v2468_v62 = vld [vmem:[%s4454_s1 + $0x38] sm:$0xff]   ;;  %4508 = vst [vmem:[#allocation2_spill] sm:$0xff] %v3191_v53 }
  0xcb   : > { %745 = vmatprep.subr.bf16.mxu0 %v671_v61  ;;  %v589_v16 = vmul.f32 %v573_v4, %v2946_v55  ;;  %v591_v46 = vmul.f32 %v575_v8, %v2942_v51  ;;  %v640_v6 = vmul.f32 %v2530_v57, %v592_v56  ;;  %v642_v20 = vmul.f32 %v3073_v41, %v594_v18  ;;  %v3193_v57 = vpop.permute.xlu1 %943 }
  0xcc   : > { %v2534_v7 = vpop.eup %2533  ;;  %v569_v45 = vsub.f32 %v3098_v22, %v3100_v34  ;;  %v669_v15 = vpack.c.bf16 %v643_v13, %v641_v14  ;;  %v568_v31 = vsub.f32 %v3093_v12, %v3096_v23  ;;  %v588_v51 = vmul.f32 %v572_v1, %v2944_v52  ;;  %4509 = vst [vmem:[#allocation3_spill] sm:$0xff] %v3193_v57 }
  0xcd   : > { %v2536_v48 = vpop.eup %2535  ;;  %v644_v5 = vmul.f32 %v2534_v7, %v596_v21  ;;  %v639_v44 = vmul.f32 %v2532_v0, %v591_v46  ;;  %v590_v39 = vmul.f32 %v574_v38, %v2940_v50  ;;  %v587_v28 = vmul.f32 %v571_v11, %v2958_v26  ;;  %v3195_v61 = vpop.permute.xlu0 %1066 }
  0xce   : > { %v2538_v43 = vpop.eup %2537  ;;  %v637_v10 = vmul.f32 %v2536_v48, %v589_v16  ;;  %v668_v41 = vpack.c.bf16 %v642_v20, %v640_v6  ;;  %v585_v34 = vmul.f32 %v569_v45, %v2964_v33  ;;  %v586_v12 = vmul.f32 %v570_v3, %v2956_v25  ;;  %v2461_v33 = vld [vmem:[%s4454_s1] sm:$0xff]   ;;  %v2462_v25 = vld [vmem:[%s4454_s1 + $0x8] sm:$0xff]   ;;  %4510 = vst [vmem:[#allocation4_spill] sm:$0xff] %v3195_v61 }
  0xcf   : > { %v2540_v19 = vpop.eup %2539  ;;  %v646_v17 = vmul.f32 %v2538_v43, %v598_v9  ;;  %v584_v52 = vmul.f32 %v568_v31, %v2962_v32  ;;  %vm712_vm0 = vcmask 523264   ;;  %v2463_v32 = vld [vmem:[%s4454_s1 + $0x10] sm:$0xff]   ;;  %v3197_v63 = vpop.permute.xlu1 %1071 }
  0xd0   : > { %v2542_v27 = vpop.eup %2541  ;;  %v638_v35 = vmul.f32 %v2540_v19, %v590_v39  ;;  %v667_v40 = vpack.c.bf16 %v639_v44, %v637_v10  ;;  %4511 = vst [vmem:[#allocation5_spill] sm:$0xff] %v3197_v63 }
  0xd1   : > { %v2544_v47 = vpop.eup %2543  ;;  %v670_v55 = vpack.c.bf16 %v646_v17, %v644_v5  ;;  %v636_v29 = vmul.f32 %v2542_v27, %v588_v51  ;;  %v3199_v4 = vpop.permute.xlu0 %928 }
  0xd2   : > { %v2546_v37 = vpop.eup %2545  ;;  %v635_v42 = vmul.f32 %v2544_v47, %v587_v28 }
  0xd3   : > { %746 = vmatpush1.bf16.msra.mxu0 %v670_v55  ;;  %v666_v50 = vpack.c.bf16 %v638_v35, %v636_v29  ;;  %v634_v49 = vmul.f32 %v2546_v37, %v586_v12  ;;  %v3201_v8 = vpop.permute.xlu1 %933 }
  0xd4   : > { %v2548_v22 = vpop.eup %2547  ;;  %747 = vmatprep.subr.bf16.mxu0 %v669_v15 }
  0xd5   : > { %v2550_v36 = vpop.eup %2549  ;;  %v632_v26 = vmul.f32 %v2548_v22, %v584_v52  ;;  %v3203_v0 = vpop.permute.xlu0 %1056 }
  0xd6   : > { %v633_v23 = vmul.f32 %v2550_v36, %v585_v34 }
  0xd7   : > { %748 = vmatpush1.bf16.msra.mxu0 %v668_v41  ;;  %v664_v60 = vpack.c.bf16 %v634_v49, %v632_v26  ;;  %v3205_v7 = vpop.permute.xlu1 %1061 }
  0xd8   : > { %749 = vmatprep.subr.bf16.mxu0 %v667_v40  ;;  %v665_v58 = vpack.c.bf16 %v635_v42, %v633_v23 }
  0xd9   : > { %v3207_v21 = vpop.permute.xlu0 %918 }
  0xdb   : > { %750 = vmatpush1.bf16.msra.mxu0 %v666_v50  ;;  %v3209_v9 = vpop.permute.xlu1 %923 }
  0xdc   : > { %751 = vmatprep.subr.bf16.mxu0 %v665_v58 }
  0xdd   : > { %v3211_v14 = vpop.permute.xlu0 %1046 }
  0xdf   : > { %752 = vmatpush1.bf16.msra.mxu0 %v664_v60  ;;  %v3213_v13 = vpop.permute.xlu1 %1051 }
  0xe1   : > { %v3215_v48 = vpop.permute.xlu0 %908 }
  0xe2   : > { %2396 = vmatmul.mubr.msk.bf16.vlgmr.msra.gmra.mxu0 %vm712_vm0, %v2461_v33 }
  0xe3   : > { %779 = vmatprep.mubr.bf16.mxu0 %v4461_v2  ;;  %v3217_v56 = vpop.permute.xlu1 %913 }
  0xe5   : > { %v3219_v18 = vpop.permute.xlu0 %1036 }
  0xe7   : > { %v3221_v1 = vpop.permute.xlu1 %1041 }
  0xe9   : > { %v3223_v38 = vpop.permute.xlu0 %898 }
  0xea   : > { %2397 = vmatmul.mubr.msk.bf16.gmra.mxu0 %vm712_vm0, %v2462_v25 }
  0xeb   : > { %789 = vmatprep.mubr.bf16.mxu0 %v4461_v2  ;;  %v3225_v43 = vpop.permute.xlu1 %903 }
  0xed   : > { %v3227_v3 = vpop.permute.xlu0 %1026 }
  0xef   : > { %v3229_v11 = vpop.permute.xlu1 %1031 }
  0xf1   : > { %v3231_v16 = vpop.permute.xlu0 %888 }
  0xf2   : > { %2398 = vmatmul.mubr.msk.bf16.gmra.mxu0 %vm712_vm0, %v2463_v32 }
  0xf3   : > { %799 = vmatprep.mubr.bf16.mxu0 %v4461_v2  ;;  %v3233_v46 = vpop.permute.xlu1 %893 }
  0xf5   : > { %v3235_v19 = vpop.permute.xlu0 %1016 }
  0xf7   : > { %v3237_v20 = vpop.permute.xlu1 %1021 }
  0xf9   : > { %v879_v27 = vpop.permute.xlu0 %878 }
  0xfa   : > { %2399 = vmatmul.mubr.msk.bf16.gmra.mxu0 %vm712_vm0, %v2464_v54 }
  0xfb   : > { %809 = vmatprep.mubr.bf16.mxu0 %v4461_v2  ;;  %v884_v44 = vpop.permute.xlu1 %883 }
  0xfd   : > { %v1007_v47 = vpop.permute.xlu0 %1006 }
  0xff   : > { %v1012_v39 = vpop.permute.xlu1 %1011 }
 0x101   : > { %v869_v28 = vpop.permute.xlu0 %868 }
 0x102   : > { %2400 = vmatmul.mubr.msk.bf16.gmra.mxu0 %vm712_vm0, %v2465_v59 }
 0x103   : > { %819 = vmatprep.mubr.bf16.mxu0 %v4461_v2  ;;  %v874_v22 = vpop.permute.xlu1 %873 }
 0x105   : > { %v997_v34 = vpop.permute.xlu0 %996 }
 0x107   : > { %v1002_v50 = vpop.permute.xlu1 %1001 }
 0x10a   : > { %2401 = vmatmul.mubr.msk.bf16.gmra.mxu0 %vm712_vm0, %v2466_v24 }
 0x10b   : > { %829 = vmatprep.mubr.bf16.mxu0 %v4461_v2 }
 0x112   : > { %2402 = vmatmul.mubr.msk.bf16.gmra.mxu0 %vm712_vm0, %v2467_v30 }
 0x113   : > { %839 = vmatprep.mubr.bf16.mxu0 %v4461_v2 }
 0x11a   : > { %2403 = vmatmul.mubr.msk.bf16.gmra.mxu0 %vm712_vm0, %v2468_v62 }
 0x11b   : > { %1746 = vmatprep.mubr.bf16.mxu0 %v4461_v2 }
 0x1a2   : > { %v771_v5 = vpop.f32.mrf.mxu0 }
 0x1a3   : > { %v946_v29 = vmul.f32 %v869_v28, %v771_v5 }
 0x1a4   : > { %v773_v17 = vpop.f32.mrf.mxu0 }
 0x1a5   : > { %v3241_v40 = vadd.f32 %v997_v34, %v946_v29  ;;  %v947_v42 = vmul.f32 %v869_v28, %v773_v17 }
 0x1a6   : > { %v775_v6 = vpop.f32.mrf.mxu0 }
 0x1a7   : > { %v948_v36 = vmul.f32 %v874_v22, %v775_v6  ;;  %v1106_v23 = vand.u32 2147483647, %v3241_v40  ;;  %v3246_v26 = vadd.f32 %v997_v34, %v947_v42  ;;  %vm1298_vm1 = vcmp.ge.f32.partialorder %v3241_v40, 0.0 }
 0x1a8   : > { %v777_v45 = vpop.f32.mrf.mxu0 }
 0x1a9   : > { %v949_v52 = vmul.f32 %v874_v22, %v777_v45  ;;  %v3248_v49 = vadd.f32 %v1002_v50, %v948_v36  ;;  %v1138_v33 = vsub.f32 0.0, %v1106_v23  ;;  %v1107_v32 = vand.u32 2147483647, %v3246_v26 }
 0x1aa   : > { %v781_v15 = vpop.f32.mrf.mxu0  ;;  %vm1299_vm2 = vcmp.ge.f32.partialorder %v3246_v26, 0.0 }
 0x1ab   : > { %v3252_v60 = vadd.f32 %v1002_v50, %v949_v52  ;;  %v950_v25 = vmul.f32 %v879_v27, %v781_v15  ;;  %v1108_v59 = vand.u32 2147483647, %v3248_v49  ;;  %v1170_v5 = vmul.f32 1.442695, %v1138_v33 }
 0x1ac   : > { %v783_v10 = vpop.f32.mrf.mxu0  ;;  %v1139_v6 = vsub.f32 0.0, %v1107_v32  ;;  %vm1300_vm3 = vcmp.ge.f32.partialorder %v3248_v49, 0.0 }
 0x1ad   : > { %v951_v54 = vmul.f32 %v879_v27, %v783_v10  ;;  %v1109_v30 = vand.u32 2147483647, %v3252_v60  ;;  %v3259_v17 = vadd.f32 %v1007_v47, %v950_v25  ;;  %v1140_v28 = vsub.f32 0.0, %v1108_v59 }
 0x1ae   : > { %v785_v31 = vpop.f32.mrf.mxu0  ;;  %2551 = vpow2.f32 %v1170_v5  ;;  %v1172_v10 = vmul.f32 1.442695, %v1139_v6  ;;  %vm1301_vm4 = vcmp.ge.f32.partialorder %v3252_v60, 0.0 }
 0x1af   : > { %v952_v62 = vmul.f32 %v884_v44, %v785_v31  ;;  %v3261_v45 = vadd.f32 %v1007_v47, %v951_v54  ;;  %v1141_v15 = vsub.f32 0.0, %v1109_v30  ;;  %v1110_v27 = vand.u32 2147483647, %v3259_v17 }
 0x1b0   : > { %v787_v55 = vpop.f32.mrf.mxu0  ;;  %v1174_v42 = vmul.f32 1.442695, %v1140_v28  ;;  %2553 = vpow2.f32 %v1172_v10  ;;  %vm1302_vm5 = vcmp.ge.f32.partialorder %v3259_v17, 0.0 }
 0x1b1   : > { %v3265_v22 = vadd.f32 %v1012_v39, %v952_v62  ;;  %v1111_v34 = vand.u32 2147483647, %v3261_v45  ;;  %v953_v31 = vmul.f32 %v884_v44, %v787_v55  ;;  %v1176_v52 = vmul.f32 1.442695, %v1141_v15 }
 0x1b2   : > { %v791_v51 = vpop.f32.mrf.mxu0  ;;  %v1142_v50 = vsub.f32 0.0, %v1110_v27  ;;  %2555 = vpow2.f32 %v1174_v42  ;;  %vm1303_vm6 = vcmp.ge.f32.partialorder %v3261_v45, 0.0 }
 0x1b3   : > { %v1112_v47 = vand.u32 2147483647, %v3265_v22  ;;  %v1143_v33 = vsub.f32 0.0, %v1111_v34  ;;  %v954_v25 = vmul.f32 %v3231_v16, %v791_v51  ;;  %v3274_v32 = vadd.f32 %v1012_v39, %v953_v31 }
 0x1b4   : > { %v793_v37 = vpop.f32.mrf.mxu0  ;;  %2557 = vpow2.f32 %v1176_v52  ;;  %v1178_v55 = vmul.f32 1.442695, %v1142_v50  ;;  %vm1304_vm7 = vcmp.ge.f32.partialorder %v3265_v22, 0.0 }
 0x1b5   : > { %v955_v23 = vmul.f32 %v3231_v16, %v793_v37  ;;  %v1144_v59 = vsub.f32 0.0, %v1112_v47  ;;  %v1180_v30 = vmul.f32 1.442695, %v1143_v33  ;;  %v3282_v62 = vadd.f32 %v3235_v19, %v954_v25 }
 0x1b6   : > { %v795_v41 = vpop.f32.mrf.mxu0  ;;  %v1113_v37 = vand.u32 2147483647, %v3274_v32  ;;  %2559 = vpow2.f32 %v1178_v55  ;;  %vm1305_vm8 = vcmp.ge.f32.partialorder %v3274_v32, 0.0 }
 0x1b7   : > { %v3279_v44 = vadd.f32 %v3235_v19, %v955_v23  ;;  %4513 = vst [vmem:[#allocation7_spill] sm:$0xff] %v3282_v62  ;;  %v1182_v16 = vmul.f32 1.442695, %v1144_v59  ;;  %v956_v39 = vmul.f32 %v3233_v46, %v795_v41  ;;  %2561 = vpow2.f32 %v1180_v30 }
 0x1b8   : > { %v3239_v35 = vpop.f32.mrf.mxu0  ;;  %v1114_v28 = vand.u32 2147483647, %v3282_v62  ;;  %v1145_v15 = vsub.f32 0.0, %v1113_v37 }
 0x1b9   : > { %4512 = vst [vmem:[#allocation6_spill] sm:$0xff] %v3279_v44  ;;  %v1115_v51 = vand.u32 2147483647, %v3279_v44  ;;  %2563 = vpow2.f32 %v1182_v16  ;;  %v3293_v10 = vadd.f32 %v3237_v20, %v956_v39  ;;  %v957_v41 = vmul.f32 %v3233_v46, %v3239_v35 }
 0x1ba   : > { %v3243_v12 = vpop.f32.mrf.mxu0  ;;  %v1146_v31 = vsub.f32 0.0, %v1114_v28  ;;  %v1184_v47 = vmul.f32 1.442695, %v1145_v15  ;;  %vm1307_vm9 = vcmp.ge.f32.partialorder %v3279_v44, 0.0 }
 0x1bb   : > { %v2552_v6 = vpop.eup %2551  ;;  %v1147_v19 = vsub.f32 0.0, %v1115_v51  ;;  %4514 = vst [vmem:[#allocation8_spill] sm:$0xff] %v3293_v10  ;;  %v1116_v25 = vand.u32 2147483647, %v3293_v10  ;;  %vm1308_vm10 = vcmp.ge.f32.partialorder %v3293_v10, 0.0 }
 0x1bc   : > { %v3250_v58 = vpop.f32.mrf.mxu0  ;;  %v1234_v34 = vadd.f32 1.0, %v2552_v6  ;;  %v1330_v42 = vmul.f32 %v2552_v6, %v2552_v6  ;;  %v1186_v16 = vmul.f32 1.442695, %v1146_v31  ;;  %2565 = vpow2.f32 %v1184_v47 }
 0x1bd   : > { %v2554_v52 = vpop.eup %2553  ;;  %v1188_v33 = vmul.f32 1.442695, %v1147_v19  ;;  %v3302_v6 = vadd.f32 %v3237_v20, %v957_v41  ;;  %v1148_v15 = vsub.f32 0.0, %v1116_v25 }
 0x1be   : > { %v3256_v24 = vpop.f32.mrf.mxu0  ;;  %v1266_v55 = vmul.f32 %v1234_v34, %v1234_v34  ;;  %v1362_v30 = vsel %vm1298_vm1, %v1330_v42, 1.0  ;;  %v1235_v37 = vadd.f32 1.0, %v2554_v52  ;;  %v1331_v51 = vmul.f32 %v2554_v52, %v2554_v52 }
 0x1bf   : > { %v2556_v50 = vpop.eup %2555  ;;  %4515 = vst [vmem:[#allocation9_spill] sm:$0xff] %v3302_v6  ;;  %2567 = vpow2.f32 %v1188_v33 }
 0x1c0   : > { %v3263_v29 = vpop.f32.mrf.mxu0  ;;  %v1236_v39 = vadd.f32 1.0, %v2556_v50  ;;  %v1332_v35 = vmul.f32 %v2556_v50, %v2556_v50  ;;  %v1394_v19 = vsub.f32 %v1266_v55, %v1362_v30  ;;  %v1458_v31 = vadd.f32 %v1362_v30, %v1266_v55 }
 0x1c1   : > { %v2558_v59 = vpop.eup %2557  ;;  %v1267_v52 = vmul.f32 %v1235_v37, %v1235_v37  ;;  %v1363_v47 = vsel %vm1299_vm2, %v1331_v51, 1.0  ;;  %2569 = vpow2.f32 %v1186_v16  ;;  %v1117_v55 = vand.u32 2147483647, %v3302_v6 }
 0x1c2   : > { %v3269_v36 = vpop.f32.mrf.mxu0  ;;  %v1237_v28 = vadd.f32 1.0, %v2558_v59  ;;  %v1333_v34 = vmul.f32 %v2558_v59, %v2558_v59  ;;  %v1268_v41 = vmul.f32 %v1236_v39, %v1236_v39  ;;  %v1364_v33 = vsel %vm1300_vm3, %v1332_v35, 1.0 }
 0x1c3   : > { %v2560_v42 = vpop.eup %2559  ;;  %v1190_v59 = vmul.f32 1.442695, %v1148_v15  ;;  %v3316_v37 = vmul.f32 %v1394_v19, %v3241_v40  ;;  %v958_v51 = vmul.f32 %v3223_v38, %v3243_v12  ;;  %2571 = vrcp.f32 %v1458_v31 }
 0x1c4   : > { %v3276_v54 = vpop.f32.mrf.mxu0  ;;  %v2562_v20 = vpop.eup %2561  ;;  %v1269_v25 = vmul.f32 %v1237_v28, %v1237_v28  ;;  %v1365_v2 = vsel %vm1301_vm4, %v1333_v34, 1.0  ;;  %v1238_v62 = vadd.f32 1.0, %v2560_v42  ;;  %v1395_v16 = vsub.f32 %v1267_v52, %v1363_v47 }
 0x1c5   : > { %4516 = vst [vmem:[#allocation10_spill] sm:$0xff] %v3316_v37  ;;  %v1334_v39 = vmul.f32 %v2560_v42, %v2560_v42  ;;  %v1239_v63 = vadd.f32 1.0, %v2562_v20  ;;  %v1459_v35 = vadd.f32 %v1363_v47, %v1267_v52  ;;  %v1396_v28 = vsub.f32 %v1268_v41, %v1364_v33 }
 0x1c6   : > { %v3285_v5 = vpop.f32.mrf.mxu0  ;;  %v2564_v30 = vpop.eup %2563  ;;  %v1335_v57 = vmul.f32 %v2562_v20, %v2562_v20  ;;  %v959_v15 = vmul.f32 %v3223_v38, %v3250_v58  ;;  %v1460_v61 = vadd.f32 %v1364_v33, %v1268_v41  ;;  %v1397_v40 = vsub.f32 %v1269_v25, %v1365_v2 }
 0x1c7   : > { %v1461_v19 = vadd.f32 %v1365_v2, %v1269_v25  ;;  %v1240_v34 = vadd.f32 1.0, %v2564_v30  ;;  %v3324_v37 = vmul.f32 %v1238_v62, %v1238_v62  ;;  %v1336_v53 = vmul.f32 %v2564_v30, %v2564_v30 }
 0x1c8   : > { %v3290_v27 = vpop.f32.mrf.mxu0  ;;  %2573 = vpow2.f32 %v1190_v59  ;;  %v3327_v12 = vadd.f32 %v3227_v3, %v958_v51  ;;  %v3330_v42 = vmul.f32 %v1395_v16, %v3246_v26  ;;  %v3334_v31 = vsel %vm1302_vm5, %v1334_v39, 1.0 }
 0x1c9   : > { %v3336_v38 = vmul.f32 %v1239_v63, %v1239_v63  ;;  %v960_v2 = vmul.f32 %v3225_v43, %v3256_v24  ;;  %2575 = vrcp.f32 %v1459_v35  ;;  %v3343_v58 = vsel %vm1303_vm6, %v1335_v57, 1.0  ;;  %v2566_v20 = vpop.eup %2565 }
 0x1ca   : > { %v3297_v23 = vpop.f32.mrf.mxu0  ;;  %4517 = vst [vmem:[#allocation11_spill] sm:$0xff] %v3327_v12  ;;  %4518 = vst [vmem:[#allocation12_spill] sm:$0xff] %v3330_v42  ;;  %v1149_v62 = vsub.f32 0.0, %v1117_v55  ;;  %v3346_v26 = vadd.f32 %v3227_v3, %v959_v15  ;;  %v3351_v63 = vmul.f32 %v1396_v28, %v3248_v49  ;;  %2577 = vrcp.f32 %v1460_v61 }
 0x1cb   : > { %v3354_v47 = vmul.f32 %v1397_v40, %v3252_v60  ;;  %v3356_v24 = vmul.f32 %v1240_v34, %v1240_v34  ;;  %2579 = vrcp.f32 %v1461_v19  ;;  %v1462_v3 = vadd.f32 %v3334_v31, %v3324_v37 }
 0x1cc   : > { %v3304_v46 = vpop.f32.mrf.mxu0  ;;  %4519 = vst [vmem:[#allocation13_spill] sm:$0xff] %v3346_v26  ;;  %v2568_v57 = vpop.eup %2567  ;;  %v3363_v41 = vsel %vm1304_vm7, %v1336_v53, 1.0  ;;  %v1118_v49 = vand.u32 2147483647, %v3327_v12  ;;  %v1463_v33 = vadd.f32 %v3343_v58, %v3336_v38  ;;  %v3373_v25 = vadd.f32 %v3229_v11, %v960_v2 }
 0x1cd   : > { %4520 = vst [vmem:[#allocation14_spill] sm:$0xff] %v3354_v47  ;;  %v1241_v59 = vadd.f32 1.0, %v2566_v20  ;;  %v1337_v55 = vmul.f32 %v2566_v20, %v2566_v20  ;;  %v1119_v30 = vand.u32 2147483647, %v3346_v26  ;;  %v961_v53 = vmul.f32 %v3225_v43, %v3263_v29 }
 0x1ce   : > { %v3311_v50 = vpop.f32.mrf.mxu0  ;;  %4521 = vst [vmem:[#allocation15_spill] sm:$0xff] %v3373_v25  ;;  %v3378_v16 = vpop.eup %2569  ;;  %v1464_v39 = vadd.f32 %v3363_v41, %v3356_v24  ;;  %v1243_v35 = vadd.f32 1.0, %v2568_v57  ;;  %v962_v28 = vmul.f32 %v3215_v48, %v3269_v36  ;;  %v963_v15 = vmul.f32 %v3215_v48, %v3276_v54 }
 0x1cf   : > { %2581 = vrcp.f32 %v1462_v3  ;;  %v1339_v40 = vmul.f32 %v2568_v57, %v2568_v57  ;;  %v1192_v19 = vmul.f32 1.442695, %v1149_v62  ;;  %v1150_v34 = vsub.f32 0.0, %v1118_v49 }
 0x1d0   : > { %v3322_v6 = vpop.f32.mrf.mxu0  ;;  %2583 = vrcp.f32 %v1463_v33  ;;  %v1120_v43 = vand.u32 2147483647, %v3373_v25  ;;  %v964_v29 = vmul.f32 %v3217_v56, %v3285_v5  ;;  %v965_v2 = vmul.f32 %v3217_v56, %v3290_v27  ;;  %v3391_v20 = vpop.eup %2571 }
 0x1d1   : > { %v3393_v60 = vmul.f32 %v1241_v59, %v1241_v59  ;;  %v3397_v48 = vsel %vm1305_vm8, %v1337_v55, 1.0  ;;  %v1151_v36 = vsub.f32 0.0, %v1119_v30  ;;  %v3400_v54 = vadd.f32 %v3229_v11, %v961_v53 }
 0x1d2   : > { %v3348_v52 = vpop.f32.mrf.mxu0  ;;  %2585 = vrcp.f32 %v1464_v39  ;;  %v3402_v57 = vmul.f32 %v1243_v35, %v1243_v35  ;;  %v3405_v5 = vadd.f32 %v3219_v18, %v962_v28  ;;  %v3408_v56 = vadd.f32 %v3219_v18, %v963_v15 }
 0x1d3   : > { %4522 = vst [vmem:[#allocation16_spill] sm:$0xff] %v3400_v54  ;;  %v3412_v27 = vsel %vm1307_vm9, %v1339_v40, 1.0  ;;  %2587 = vpow2.f32 %v1192_v19  ;;  %v1194_v3 = vmul.f32 1.442695, %v1150_v34  ;;  %v966_v11 = vmul.f32 %v3207_v21, %v3297_v23 }
 0x1d4   : > { %v833_v51 = vpop.f32.mrf.mxu0  ;;  %4523 = vst [vmem:[#allocation17_spill] sm:$0xff] %v3402_v57  ;;  %4524 = vst [vmem:[#allocation18_spill] sm:$0xff] %v3405_v5  ;;  %v1152_v33 = vsub.f32 0.0, %v1120_v43  ;;  %v3417_v59 = vadd.f32 %v3221_v1, %v964_v29  ;;  %v3420_v55 = vadd.f32 %v3221_v1, %v965_v2  ;;  %v967_v18 = vmul.f32 %v3207_v21, %v3304_v46 }
 0x1d5   : > { %4525 = vst [vmem:[#allocation19_spill] sm:$0xff] %v3408_v56  ;;  %4526 = vst [vmem:[#allocation20_spill] sm:$0xff] %v3412_v27  ;;  %v2574_v49 = vpop.eup %2573  ;;  %v3426_v30 = vadd.f32 %v3397_v48, %v3393_v60  ;;  %v1196_v53 = vmul.f32 1.442695, %v1151_v36  ;;  %v1121_v39 = vand.u32 2147483647, %v3400_v54  ;;  %v968_v23 = vmul.f32 %v3209_v9, %v3311_v50 }
 0x1d6   : > { %v835_v62 = vpop.f32.mrf.mxu0  ;;  %4527 = vst [vmem:[#allocation21_spill] sm:$0xff] %v3417_v59  ;;  %4528 = vst [vmem:[#allocation22_spill] sm:$0xff] %v3420_v55  ;;  %v3431_v28 = vpop.eup %2575  ;;  %v3435_v1 = vadd.f32 %v3412_v27, %v3402_v57  ;;  %v1122_v15 = vand.u32 2147483647, %v3405_v5  ;;  %v1123_v21 = vand.u32 2147483647, %v3408_v56  ;;  %v969_v46 = vmul.f32 %v3209_v9, %v3322_v6 }
 0x1d7   : > { %4529 = vst [vmem:[#allocation23_spill] sm:$0xff] %v3431_v28  ;;  %v3441_v40 = vpop.eup %2577  ;;  %v1244_v19 = vadd.f32 1.0, %v2574_v49  ;;  %2589 = vpow2.f32 %v1194_v3  ;;  %v3444_v50 = vadd.f32 %v3211_v14, %v966_v11  ;;  %v971_v34 = vmul.f32 %v3199_v4, %v833_v51  ;;  %v4534_v5 = vld [vmem:[#allocation2_spill] sm:$0xff] }
 0x1d8   : > { %v837_v35 = vpop.f32.mrf.mxu0  ;;  %v3447_v43 = vpop.eup %2579  ;;  %v1198_v29 = vmul.f32 1.442695, %v1152_v33  ;;  %v1124_v2 = vand.u32 2147483647, %v3417_v59  ;;  %v1125_v36 = vand.u32 2147483647, %v3420_v55  ;;  %v3452_v61 = vadd.f32 %v3211_v14, %v967_v18 }
 0x1d9   : > { %4530 = vst [vmem:[#allocation24_spill] sm:$0xff] %v3444_v50  ;;  %4531 = vst [vmem:[#allocation25_spill] sm:$0xff] %v3447_v43  ;;  %2591 = vpow2.f32 %v1196_v53  ;;  %v1153_v9 = vsub.f32 0.0, %v1121_v39  ;;  %v3455_v6 = vadd.f32 %v3213_v13, %v968_v23  ;;  %v970_v3 = vmul.f32 %v3199_v4, %v3348_v52 }
 0x1da   : > { %v841_v11 = vpop.f32.mrf.mxu0  ;;  %v1154_v51 = vsub.f32 0.0, %v1122_v15  ;;  %v1155_v44 = vsub.f32 0.0, %v1123_v21  ;;  %v3460_v33 = vadd.f32 %v3213_v13, %v969_v46  ;;  %v972_v57 = vmul.f32 %v3201_v8, %v835_v62 }
 0x1db   : > { %4532 = vst [vmem:[#allocation26_spill] sm:$0xff] %v3455_v6  ;;  %v1340_v27 = vmul.f32 %v2574_v49, %v2574_v49  ;;  %v1126_v14 = vand.u32 2147483647, %v3444_v50  ;;  %v3465_v18 = vadd.f32 %v3203_v0, %v971_v34  ;;  %v973_v53 = vmul.f32 %v3201_v8, %v837_v35 }
 0x1dc   : > { %v3468_v39 = vpop.eup %2581  ;;  %2593 = vpow2.f32 %v1198_v29  ;;  %v1156_v4 = vsub.f32 0.0, %v1124_v2  ;;  %v1157_v52 = vsub.f32 0.0, %v1125_v36  ;;  %v1127_v23 = vand.u32 2147483647, %v3452_v61  ;;  %v843_v8 = vpop.f32.mrf.mxu0 }
 0x1dd   : > { %v3471_v15 = vpop.eup %2583  ;;  %v3473_v13 = vmul.f32 %v1244_v19, %v1244_v19  ;;  %v1200_v62 = vmul.f32 1.442695, %v1153_v9  ;;  %v1128_v49 = vand.u32 2147483647, %v3455_v6  ;;  %v3478_v21 = vadd.f32 %v3203_v0, %v970_v3  ;;  %v4535_v6 = vld [vmem:[#allocation4_spill] sm:$0xff] }
 0x1de   : > { %v1202_v35 = vmul.f32 1.442695, %v1154_v51  ;;  %v1204_v46 = vmul.f32 1.442695, %v1155_v44  ;;  %v1129_v34 = vand.u32 2147483647, %v3460_v33  ;;  %v3482_v29 = vadd.f32 %v3205_v7, %v972_v57 }
 0x1df   : > { %4533 = vst [vmem:[#allocation27_spill] sm:$0xff] %v3473_v13  ;;  %v3484_v2 = vpop.eup %2585  ;;  %v1158_v19 = vsub.f32 0.0, %v1126_v14  ;;  %v1131_v36 = vand.u32 2147483647, %v3465_v18  ;;  %v3488_v9 = vadd.f32 %v3205_v7, %v973_v53  ;;  %v974_v54 = vmul.f32 %v4534_v5, %v841_v11 }
 0x1e0   : > { %v2588_v0 = vpop.eup %2587  ;;  %v1206_v3 = vmul.f32 1.442695, %v1156_v4  ;;  %v1208_v59 = vmul.f32 1.442695, %v1157_v52  ;;  %v1159_v51 = vsub.f32 0.0, %v1127_v23  ;;  %v975_v44 = vmul.f32 %v4534_v5, %v843_v8  ;;  %v4536_v23 = vld [vmem:[#allocation9_spill] sm:$0xff] }
 0x1e1   : > { %2595 = vpow2.f32 %v1200_v62  ;;  %v1160_v56 = vsub.f32 0.0, %v1128_v49  ;;  %v1130_v57 = vand.u32 2147483647, %v3478_v21  ;;  %v1133_v50 = vand.u32 2147483647, %v3488_v9 }
 0x1e2   : > { %v1161_v14 = vsub.f32 0.0, %v1129_v34  ;;  %v1132_v55 = vand.u32 2147483647, %v3482_v29  ;;  %v3496_v7 = vadd.f32 %v4535_v6, %v974_v54  ;;  %v3499_v11 = vadd.f32 %v4535_v6, %v975_v44  ;;  %v845_v34 = vpop.f32.mrf.mxu0 }
 0x1e3   : > { %v1245_v53 = vadd.f32 1.0, %v2588_v0  ;;  %2597 = vpow2.f32 %v1202_v35  ;;  %v1210_v4 = vmul.f32 1.442695, %v1158_v19  ;;  %v1163_v52 = vsub.f32 0.0, %v1131_v36 }
 0x1e4   : > { %v2590_v5 = vpop.eup %2589  ;;  %vm1309_vm11 = vcmp.ge.f32.partialorder %v4536_v23, 0.0  ;;  %2599 = vpow2.f32 %v1204_v46  ;;  %v1212_v62 = vmul.f32 1.442695, %v1159_v51  ;;  %v1165_v49 = vsub.f32 0.0, %v1133_v50 }
 0x1e5   : > { %v1134_v8 = vand.u32 2147483647, %v3496_v7  ;;  %vm1310_vm12 = vcmp.ge.f32.partialorder %v3327_v12, 0.0  ;;  %2601 = vpow2.f32 %v1206_v3  ;;  %v1214_v54 = vmul.f32 1.442695, %v1160_v56 }
 0x1e6   : > { %v1162_v43 = vsub.f32 0.0, %v1130_v57  ;;  %v1135_v6 = vand.u32 2147483647, %v3499_v11  ;;  %v2592_v44 = vpop.eup %2591  ;;  %v3507_v35 = vsel %vm1308_vm10, %v1340_v27, 1.0  ;;  %2603 = vpow2.f32 %v1208_v59  ;;  %v847_v57 = vpop.f32.mrf.mxu0 }
 0x1e7   : > { %4537 = vst [vmem:[#allocation2_spill] sm:$0xff] %v3507_v35  ;;  %v1216_v19 = vmul.f32 1.442695, %v1161_v14  ;;  %v1164_v46 = vsub.f32 0.0, %v1132_v55  ;;  %v1341_v36 = vmul.f32 %v2588_v0, %v2588_v0  ;;  %vm1311_vm13 = vcmp.ge.f32.partialorder %v3346_v26, 0.0  ;;  %v4539_v14 = vld [vmem:[#allocation3_spill] sm:$0xff] }
 0x1e8   : > { %2605 = vpow2.f32 %v1210_v4  ;;  %v1220_v50 = vmul.f32 1.442695, %v1163_v52  ;;  %v1166_v51 = vsub.f32 0.0, %v1134_v8  ;;  %v3510_v47 = vmul.f32 %v1245_v53, %v1245_v53  ;;  %v4540_v53 = vld [vmem:[#allocation5_spill] sm:$0xff] }
 0x1e9   : > { %vm1312_vm14 = vcmp.ge.f32.partialorder %v3373_v25, 0.0  ;;  %2607 = vpow2.f32 %v1212_v62  ;;  %v1224_v56 = vmul.f32 1.442695, %v1165_v49  ;;  %v1167_v3 = vsub.f32 0.0, %v1135_v6  ;;  %v2594_v10 = vpop.eup %2593 }
 0x1ea   : > { %4538 = vst [vmem:[#allocation4_spill] sm:$0xff] %v3510_v47  ;;  %v1246_v27 = vadd.f32 1.0, %v2590_v5  ;;  %2609 = vpow2.f32 %v1214_v54  ;;  %v1218_v59 = vmul.f32 1.442695, %v1162_v43  ;;  %v976_v55 = vmul.f32 %v4539_v14, %v845_v34 }
 0x1eb   : > { %v1342_v0 = vmul.f32 %v2590_v5, %v2590_v5  ;;  %v1247_v28 = vadd.f32 1.0, %v2592_v44  ;;  %2611 = vpow2.f32 %v1216_v19  ;;  %v1222_v4 = vmul.f32 1.442695, %v1164_v46 }
 0x1ec   : > { %2613 = vpow2.f32 %v1220_v50  ;;  %v1226_v52 = vmul.f32 1.442695, %v1166_v51  ;;  %v3515_v8 = vadd.f32 %v4540_v53, %v976_v55  ;;  %v977_v62 = vmul.f32 %v4539_v14, %v847_v57 }
 0x1ed   : > { %v1343_v49 = vmul.f32 %v2592_v44, %v2592_v44  ;;  %v1248_v6 = vadd.f32 1.0, %v2594_v10  ;;  %2615 = vpow2.f32 %v1224_v56  ;;  %v1228_v42 = vmul.f32 1.442695, %v1167_v3 }
 0x1ee   : > { %v3520_v43 = vsel %vm1309_vm11, %v1341_v36, 1.0  ;;  %v1344_v34 = vmul.f32 %v2594_v10, %v2594_v10  ;;  %2617 = vpow2.f32 %v1218_v59  ;;  %v1136_v5 = vand.u32 2147483647, %v3515_v8  ;;  %v2596_v54 = vpop.eup %2595 }
 0x1ef   : > { %4541 = vst [vmem:[#allocation3_spill] sm:$0xff] %v3520_v43  ;;  %v1468_v19 = vadd.f32 %v3507_v35, %v3473_v13  ;;  %v3525_v46 = vmul.f32 %v1246_v27, %v1246_v27  ;;  %v3529_v44 = vsel %vm1310_vm12, %v1342_v0, 1.0  ;;  %2619 = vpow2.f32 %v1222_v4 }
 0x1f0   : > { %4543 = vst [vmem:[#allocation28_spill] sm:$0xff] %v3529_v44  ;;  %v3531_v50 = vmul.f32 %v1247_v28, %v1247_v28  ;;  %2621 = vpow2.f32 %v1226_v52  ;;  %v1168_v36 = vsub.f32 0.0, %v1136_v5  ;;  %v3534_v10 = vadd.f32 %v4540_v53, %v977_v62  ;;  %v2598_v51 = vpop.eup %2597 }
 0x1f1   : > { %4542 = vst [vmem:[#allocation5_spill] sm:$0xff] %v3525_v46  ;;  %v1469_v56 = vadd.f32 %v3520_v43, %v3510_v47  ;;  %v3540_v3 = vsel %vm1311_vm13, %v1343_v49, 1.0  ;;  %v3542_v57 = vmul.f32 %v1248_v6, %v1248_v6  ;;  %2623 = vpow2.f32 %v1228_v42  ;;  %v2600_v27 = vpop.eup %2599  ;;  %v4554_v47 = vld [vmem:[#allocation12_spill] sm:$0xff] }
 0x1f2   : > { %4544 = vst [vmem:[#allocation29_spill] sm:$0xff] %v3531_v50  ;;  %v1400_v28 = vsub.f32 %v3356_v24, %v3363_v41  ;;  %2625 = vrcp.f32 %v3426_v30  ;;  %v3549_v59 = vsel %vm1312_vm14, %v1344_v34, 1.0  ;;  %v1230_v14 = vmul.f32 1.442695, %v1168_v36  ;;  %v2602_v55 = vpop.eup %2601 }
 0x1f3   : > { %4545 = vst [vmem:[#allocation30_spill] sm:$0xff] %v3542_v57  ;;  %4546 = vst [vmem:[#allocation31_spill] sm:$0xff] %v3549_v59  ;;  %v4547_v0 = vsub.f32 %v3324_v37, %v3334_v31  ;;  %v1401_v42 = vsub.f32 %v3393_v60, %v3397_v48  ;;  %2627 = vrcp.f32 %v3435_v1  ;;  %v1470_v24 = vadd.f32 %v3529_v44, %v3525_v46  ;;  %v2604_v41 = vpop.eup %2603 }
 0x1f4   : > { %v4548_v30 = vsub.f32 %v3336_v38, %v3343_v58  ;;  %2629 = vrcp.f32 %v1468_v19  ;;  %v1471_v37 = vadd.f32 %v3540_v3, %v3531_v50  ;;  %v3570_v60 = vadd.f32 1.0, %v3378_v16  ;;  %v4549_v58 = vld [vmem:[#allocation10_spill] sm:$0xff] }
 0x1f5   : > { %v1430_v4 = vmul.f32 %v4547_v0, %v3259_v17  ;;  %v1137_v17 = vand.u32 2147483647, %v3534_v10  ;;  %v2606_v31 = vpop.eup %2605  ;;  %v3574_v48 = vmul.f32 %v3378_v16, %v3378_v16  ;;  %2631 = vrcp.f32 %v1469_v56 }
 0x1f6   : > { %v3564_v52 = vmul.f32 %v4548_v30, %v3261_v45  ;;  %v1472_v38 = vadd.f32 %v3549_v59, %v3542_v57  ;;  %v2608_v45 = vpop.eup %2607  ;;  %v3580_v1 = vmul.f32 %v3391_v20, %v4549_v58  ;;  %v1432_v53 = vmul.f32 %v1400_v28, %v3265_v22  ;;  %v4556_v57 = vld [vmem:[#allocation14_spill] sm:$0xff]  ;;  %v4557_v59 = vld [vmem:[#allocation25_spill] sm:$0xff] }
 0x1f7   : > { %2633 = vpow2.f32 %v1230_v14  ;;  %v1169_v62 = vsub.f32 0.0, %v1137_v17  ;;  %v3583_v49 = vpop.eup %2609  ;;  %v3587_v6 = vmul.f32 %v3441_v40, %v3351_v63  ;;  %v1526_v16 = vmul.f32 %v3468_v39, %v1430_v4 }
 0x1f8   : > { %v1433_v34 = vmul.f32 %v1401_v42, %v3274_v32  ;;  %2635 = vrcp.f32 %v1470_v24  ;;  %v2612_v5 = vpop.eup %2611  ;;  %v1528_v19 = vmul.f32 %v3484_v2, %v1432_v53  ;;  %v1253_v20 = vadd.f32 1.0, %v2604_v41 }
 0x1f9   : > { %2637 = vrcp.f32 %v1471_v37  ;;  %v1232_v36 = vmul.f32 1.442695, %v1169_v62  ;;  %v2614_v22 = vpop.eup %2613  ;;  %v3592_v56 = vadd.f32 1.0, %v2596_v54  ;;  %v3594_v28 = vmul.f32 %v2596_v54, %v2596_v54 }
 0x1fa   : > { %2639 = vrcp.f32 %v1472_v38  ;;  %v3596_v14 = vadd.f32 1.0, %v2598_v51  ;;  %v2616_v63 = vpop.eup %2615  ;;  %v3598_v40 = vmul.f32 %v2598_v51, %v2598_v51  ;;  %v3600_v39 = vadd.f32 1.0, %v2600_v27 }
 0x1fb   : > { %v3602_v32 = vmul.f32 %v2600_v27, %v2600_v27  ;;  %v1255_v0 = vadd.f32 1.0, %v2608_v45  ;;  %v3604_v2 = vpop.eup %2617  ;;  %v3606_v4 = vadd.f32 1.0, %v2602_v55  ;;  %v3608_v42 = vmul.f32 %v2602_v55, %v2602_v55 }
 0x1fc   : > { %v3610_v24 = vmul.f32 %v2604_v41, %v2604_v41  ;;  %2641 = vpow2.f32 %v1232_v36  ;;  %v2620_v54 = vpop.eup %2619  ;;  %v3612_v30 = vmul.f32 %v1253_v20, %v1253_v20  ;;  %v1259_v37 = vadd.f32 1.0, %v2614_v22 }
 0x1fd   : > { %vm1323_vm15 = vcmp.ge.f32.partialorder %v3465_v18, 0.0  ;;  %v1355_v51 = vmul.f32 %v2614_v22, %v2614_v22  ;;  %v2622_v17 = vpop.eup %2621  ;;  %v3615_v27 = vadd.f32 1.0, %v2606_v31  ;;  %v3617_v38 = vmul.f32 %v2606_v31, %v2606_v31 }
 0x1fe   : > { %v1261_v58 = vadd.f32 1.0, %v2616_v63  ;;  %vm1325_vm0 = vcmp.ge.f32.partialorder %v3488_v9, 0.0  ;;  %v2624_v55 = vpop.eup %2623  ;;  %v3620_v53 = vmul.f32 %v1255_v0, %v1255_v0  ;;  %v3622_v41 = vmul.f32 %v2608_v45, %v2608_v45 }
 0x1ff   : > { %v3625_v62 = vadd.f32 1.0, %v3583_v49  ;;  %vm1326_vm1 = vcmp.ge.f32.partialorder %v3496_v7, 0.0  ;;  %v2626_v20 = vpop.eup %2625  ;;  %v1257_v36 = vadd.f32 1.0, %v2612_v5  ;;  %vm1321_vm2 = vcmp.ge.f32.partialorder %v3460_v33, 0.0 }
 0x200   : > { %v1353_v22 = vmul.f32 %v2612_v5, %v2612_v5  ;;  %v1258_v31 = vadd.f32 1.0, %v3604_v2  ;;  %vm1327_vm3 = vcmp.ge.f32.partialorder %v3499_v11, 0.0  ;;  %v3631_v12 = vpop.eup %2627  ;;  %v3633_v0 = vmul.f32 %v1259_v37, %v1259_v37 }
 0x201   : > { %4550 = vst [vmem:[#allocation10_spill] sm:$0xff] %v3631_v12  ;;  %v3637_v45 = vsel %vm1323_vm15, %v1355_v51, 1.0  ;;  %vm1324_vm4 = vcmp.ge.f32.partialorder %v3482_v29, 0.0  ;;  %v1357_v23 = vmul.f32 %v2616_v63, %v2616_v63  ;;  %vm1328_vm5 = vcmp.ge.f32.partialorder %v3515_v8, 0.0  ;;  %v3641_v25 = vpop.eup %2629 }
 0x202   : > { %4551 = vst [vmem:[#allocation32_spill] sm:$0xff] %v3641_v25  ;;  %v1260_v5 = vadd.f32 1.0, %v2620_v54  ;;  %v3643_v13 = vmul.f32 %v1261_v58, %v1261_v58  ;;  %v1262_v35 = vadd.f32 1.0, %v2622_v17  ;;  %v1263_v26 = vadd.f32 1.0, %v2624_v55  ;;  %v3645_v46 = vpop.eup %2631  ;;  %v4555_v58 = vld [vmem:[#allocation23_spill] sm:$0xff] }
 0x203   : > { %4552 = vst [vmem:[#allocation33_spill] sm:$0xff] %v3645_v46  ;;  %vm1322_vm6 = vcmp.ge.f32.partialorder %v3478_v21, 0.0  ;;  %v1359_v37 = vmul.f32 %v2624_v55, %v2624_v55  ;;  %v1527_v51 = vmul.f32 %v3471_v15, %v3564_v52  ;;  %v1529_v12 = vmul.f32 %v2626_v20, %v1433_v34  ;;  %v4560_v15 = vld [vmem:[#allocation26_spill] sm:$0xff] }
 0x204   : > { %v3650_v44 = vpack.c.bf16 %v1528_v19, %v1526_v16  ;;  %v2634_v63 = vpop.eup %2633  ;;  %vm1319_vm7 = vcmp.ge.f32.partialorder %v3452_v61, 0.0  ;;  %v1358_v25 = vmul.f32 %v2622_v17, %v2622_v17  ;;  %v1523_v43 = vmul.f32 %v4555_v58, %v4554_v47  ;;  %v4563_v17 = vld [vmem:[#allocation22_spill] sm:$0xff] }
 0x205   : > { %v1525_v50 = vmul.f32 %v4557_v59, %v4556_v57  ;;  %v3659_v46 = vpack.c.bf16 %v3587_v6, %v3580_v1  ;;  %v3661_v55 = vpop.eup %2635  ;;  %vm1320_vm8 = vcmp.ge.f32.partialorder %v4560_v15, 0.0  ;;  %v3666_v52 = vsel %vm1325_vm0, %v1357_v23, 1.0  ;;  %v4566_v23 = vld [vmem:[#allocation24_spill] sm:$0xff] }
 0x206   : > { %4553 = vst [vmem:[#allocation34_spill] sm:$0xff] %v3650_v44  ;;  %4559 = vst [vmem:[#allocation23_spill] sm:$0xff] %v3661_v55  ;;  %v1264_v16 = vadd.f32 1.0, %v2634_v63  ;;  %v1360_v34 = vmul.f32 %v2634_v63, %v2634_v63  ;;  %v3668_v19 = vpack.c.bf16 %v1529_v12, %v1527_v51  ;;  %v3670_v47 = vpop.eup %2637  ;;  %vm1317_vm9 = vcmp.ge.f32.partialorder %v4563_v17, 0.0  ;;  %v4570_v55 = vld [vmem:[#allocation18_spill] sm:$0xff] }
 0x207   : > { %4558 = vst [vmem:[#allocation12_spill] sm:$0xff] %v3659_v46  ;;  %4562 = vst [vmem:[#allocation25_spill] sm:$0xff] %v3670_v47  ;;  %v1483_v57 = vadd.f32 %v3637_v45, %v3633_v0  ;;  %v1356_v59 = vmul.f32 %v2620_v54, %v2620_v54  ;;  %v3675_v1 = vmul.f32 %v1263_v26, %v1263_v26  ;;  %v3679_v20 = vpop.eup %2639  ;;  %vm1318_vm10 = vcmp.ge.f32.partialorder %v4566_v23, 0.0  ;;  %v4567_v26 = vld [vmem:[#allocation19_spill] sm:$0xff] }
 0x208   : > { %4561 = vst [vmem:[#allocation14_spill] sm:$0xff] %v3668_v19  ;;  %v3677_v6 = vpack.c.bf16 %v1525_v50, %v1523_v43  ;;  %4565 = vst [vmem:[#allocation22_spill] sm:$0xff] %v3679_v20  ;;  %v3682_v58 = vmul.f32 %v1262_v35, %v1262_v35  ;;  %v3686_v12 = vsel %vm1327_vm3, %v1359_v37, 1.0  ;;  %v3688_v51 = vmul.f32 %v1264_v16, %v1264_v16  ;;  %v4568_v16 = vld [vmem:[#allocation21_spill] sm:$0xff] }
 0x209   : > { %v3692_v63 = vsel %vm1328_vm5, %v1360_v34, 1.0  ;;  %vm1315_vm11 = vcmp.ge.f32.partialorder %v4567_v26, 0.0  ;;  %v1352_v43 = vmul.f32 %v3583_v49, %v3583_v49  ;;  %v1354_v50 = vmul.f32 %v3604_v2, %v3604_v2  ;;  %v2642_v37 = vpop.eup %2641 }
 0x20a   : > { %4564 = vst [vmem:[#allocation26_spill] sm:$0xff] %v3677_v6  ;;  %v1485_v35 = vadd.f32 %v3666_v52, %v3643_v13  ;;  %v3703_v54 = vsel %vm1326_vm1, %v1358_v25, 1.0  ;;  %vm1316_vm12 = vcmp.ge.f32.partialorder %v4568_v16, 0.0  ;;  %v3706_v34 = vmul.f32 %v1257_v36, %v1257_v36  ;;  %v4569_v6 = vld [vmem:[#allocation16_spill] sm:$0xff] }
 0x20b   : > { %v3710_v46 = vsel %vm1321_vm2, %v1353_v22, 1.0  ;;  %v3712_v49 = vmul.f32 %v1260_v5, %v1260_v5  ;;  %v1488_v2 = vadd.f32 %v3692_v63, %v3688_v51  ;;  %vm1313_vm13 = vcmp.ge.f32.partialorder %v4569_v6, 0.0 }
 0x20c   : > { %v3719_v25 = vsel %vm1324_vm4, %v1356_v59, 1.0  ;;  %v1487_v44 = vadd.f32 %v3686_v12, %v3675_v1  ;;  %v1265_v36 = vadd.f32 1.0, %v2642_v37  ;;  %v1361_v19 = vmul.f32 %v2642_v37, %v2642_v37 }
 0x20d   : > { %vm1314_vm14 = vcmp.ge.f32.partialorder %v4570_v55, 0.0  ;;  %v3724_v22 = vmul.f32 %v1258_v31, %v1258_v31  ;;  %2643 = vrcp.f32 %v1483_v57  ;;  %v1486_v5 = vadd.f32 %v3703_v54, %v3682_v58 }
 0x20e   : > { %vm1329_vm15 = vcmp.ge.f32.partialorder %v3534_v10, 0.0  ;;  %v3731_v20 = vsel %vm1322_vm6, %v1354_v50, 1.0  ;;  %2645 = vrcp.f32 %v1485_v35  ;;  %v3733_v59 = vmul.f32 %v1265_v36, %v1265_v36 }
 0x20f   : > { %v3735_v47 = vsel %vm1329_vm15, %v1361_v19, 1.0  ;;  %v3740_v31 = vsel %vm1319_vm7, %v3622_v41, 1.0  ;;  %v3744_v57 = vmul.f32 %v3625_v62, %v3625_v62  ;;  %v1484_v37 = vadd.f32 %v3719_v25, %v3712_v49 }
 0x210   : > { %2647 = vrcp.f32 %v1488_v2  ;;  %v3750_v50 = vsel %vm1320_vm8, %v1352_v43, 1.0  ;;  %v1481_v19 = vadd.f32 %v3710_v46, %v3706_v34  ;;  %v1489_v41 = vadd.f32 %v3735_v47, %v3733_v59 }
 0x211   : > { %2649 = vrcp.f32 %v1487_v44  ;;  %v3759_v62 = vsel %vm1317_vm9, %v3610_v24, 1.0  ;;  %v3763_v35 = vmul.f32 %v3615_v27, %v3615_v27  ;;  %v1482_v43 = vadd.f32 %v3731_v20, %v3724_v22 }
 0x212   : > { %2651 = vrcp.f32 %v1486_v5  ;;  %v3769_v2 = vmul.f32 %v3600_v39, %v3600_v39  ;;  %v3774_v44 = vsel %vm1318_vm10, %v3617_v38, 1.0  ;;  %v1479_v24 = vadd.f32 %v3740_v31, %v3620_v53 }
 0x213   : > { %2653 = vrcp.f32 %v1489_v41  ;;  %v3781_v27 = vsel %vm1315_vm11, %v3602_v32, 1.0  ;;  %v3785_v36 = vmul.f32 %v3606_v4, %v3606_v4  ;;  %v1480_v39 = vadd.f32 %v3750_v50, %v3744_v57  ;;  %v4571_v41 = vld [vmem:[#allocation7_spill] sm:$0xff] }
 0x214   : > { %2655 = vrcp.f32 %v1484_v37  ;;  %v3791_v38 = vmul.f32 %v3592_v56, %v3592_v56  ;;  %v3796_v5 = vsel %vm1316_vm12, %v3608_v42, 1.0  ;;  %v1477_v32 = vadd.f32 %v3759_v62, %v3612_v30 }
 0x215   : > { %2657 = vrcp.f32 %v1481_v19  ;;  %v3803_v4 = vsel %vm1313_vm13, %v3594_v28, 1.0  ;;  %v3807_v37 = vmul.f32 %v3596_v14, %v3596_v14  ;;  %v1478_v56 = vadd.f32 %v3774_v44, %v3763_v35 }
 0x216   : > { %2659 = vrcp.f32 %v1482_v43  ;;  %v3814_v42 = vsel %vm1314_vm14, %v3598_v40, 1.0  ;;  %v1475_v19 = vadd.f32 %v3781_v27, %v3769_v2  ;;  %v1476_v28 = vadd.f32 %v3796_v5, %v3785_v36 }
 0x217   : > { %2661 = vrcp.f32 %v1479_v24  ;;  %v3822_v14 = vmul.f32 %v3570_v60, %v3570_v60  ;;  %vm1306_vm0 = vcmp.ge.f32.partialorder %v4571_v41, 0.0  ;;  %v1473_v43 = vadd.f32 %v3803_v4, %v3791_v38 }
 0x218   : > { %2663 = vrcp.f32 %v1480_v39  ;;  %v3828_v40 = vsel %vm1306_vm0, %v3574_v48, 1.0  ;;  %v1474_v24 = vadd.f32 %v3814_v42, %v3807_v37  ;;  %v1424_v39 = vsub.f32 %v3688_v51, %v3692_v63 }
 0x219   : > { %2665 = vrcp.f32 %v1477_v32  ;;  %v1421_v60 = vsub.f32 %v3643_v13, %v3666_v52  ;;  %v1423_v41 = vsub.f32 %v3675_v1, %v3686_v12  ;;  %v1425_v32 = vsub.f32 %v3733_v59, %v3735_v47 }
 0x21a   : > { %2667 = vrcp.f32 %v1478_v56  ;;  %v2644_v55 = vpop.eup %2643  ;;  %v1422_v6 = vsub.f32 %v3682_v58, %v3703_v54  ;;  %v1419_v51 = vsub.f32 %v3633_v0, %v3637_v45  ;;  %v1466_v13 = vadd.f32 %v3828_v40, %v3822_v14 }
 0x21b   : > { %2669 = vrcp.f32 %v1475_v19  ;;  %v2646_v48 = vpop.eup %2645  ;;  %v1420_v52 = vsub.f32 %v3712_v49, %v3719_v25  ;;  %v1456_v47 = vmul.f32 %v1424_v39, %v3515_v8  ;;  %v1417_v12 = vsub.f32 %v3706_v34, %v3710_v46 }
 0x21c   : > { %2671 = vrcp.f32 %v1476_v28  ;;  %v1453_v58 = vmul.f32 %v1421_v60, %v3488_v9  ;;  %v1455_v54 = vmul.f32 %v1423_v41, %v3499_v11  ;;  %v1457_v0 = vmul.f32 %v1425_v32, %v3534_v10 }
 0x21d   : > { %v2648_v56 = vpop.eup %2647  ;;  %2673 = vrcp.f32 %v1473_v43  ;;  %v1415_v59 = vsub.f32 %v3620_v53, %v3740_v31  ;;  %v1418_v19 = vsub.f32 %v3724_v22, %v3731_v20  ;;  %v1454_v49 = vmul.f32 %v1422_v6, %v3496_v7 }
 0x21e   : > { %v2650_v63 = vpop.eup %2649  ;;  %2675 = vrcp.f32 %v1474_v24  ;;  %v1552_v8 = vmul.f32 %v2648_v56, %v1456_v47  ;;  %v1451_v28 = vmul.f32 %v1419_v51, %v3465_v18  ;;  %v1549_v9 = vmul.f32 %v2646_v48, %v1453_v58  ;;  %v4572_v51 = vld [vmem:[#allocation29_spill] sm:$0xff]  ;;  %v4574_v47 = vld [vmem:[#allocation30_spill] sm:$0xff] }
 0x21f   : > { %v2652_v1 = vpop.eup %2651  ;;  %v1551_v46 = vmul.f32 %v2650_v63, %v1455_v54  ;;  %v1411_v11 = vsub.f32 %v3769_v2, %v3781_v27  ;;  %v1416_v10 = vsub.f32 %v3744_v57, %v3750_v50  ;;  %v1452_v53 = vmul.f32 %v1420_v52, %v3482_v29  ;;  %v4573_v52 = vld [vmem:[#allocation31_spill] sm:$0xff] }
 0x220   : > { %v2654_v45 = vpop.eup %2653  ;;  %v1550_v31 = vmul.f32 %v2652_v1, %v1454_v49  ;;  %v1413_v7 = vsub.f32 %v3612_v30, %v3759_v62  ;;  %v1449_v6 = vmul.f32 %v1417_v12, %v3460_v33  ;;  %v1547_v22 = vmul.f32 %v2644_v55, %v1451_v28  ;;  %v4580_v49 = vld [vmem:[#allocation18_spill] sm:$0xff] }
 0x221   : > { %v2656_v25 = vpop.eup %2655  ;;  %v1553_v34 = vmul.f32 %v2654_v45, %v1457_v0  ;;  %v1414_v24 = vsub.f32 %v3763_v35, %v3774_v44  ;;  %v1450_v2 = vmul.f32 %v1418_v19, %v3478_v21  ;;  %v1447_v29 = vmul.f32 %v1415_v59, %v3452_v61  ;;  %v4577_v0 = vld [vmem:[#allocation16_spill] sm:$0xff]  ;;  %v4579_v59 = vld [vmem:[#allocation5_spill] sm:$0xff] }
 0x222   : > { %v2658_v43 = vpop.eup %2657  ;;  %v1548_v27 = vmul.f32 %v2656_v25, %v1452_v53  ;;  %v1604_v39 = vpack.c.bf16 %v1552_v8, %v1550_v31  ;;  %v1603_v50 = vpack.c.bf16 %v1549_v9, %v1547_v22  ;;  %2677 = vrcp.f32 %v1466_v13  ;;  %v4583_v9 = vld [vmem:[#allocation13_spill] sm:$0xff]  ;;  %v4584_v53 = vld [vmem:[#allocation2_spill] sm:$0xff]  ;;  %v4585_v31 = vld [vmem:[#allocation27_spill] sm:$0xff] }
 0x223   : > { %v2660_v20 = vpop.eup %2659  ;;  %v1605_v18 = vpack.c.bf16 %v1553_v34, %v1551_v46  ;;  %v1545_v60 = vmul.f32 %v2658_v43, %v1449_v6  ;;  %v1412_v33 = vsub.f32 %v3785_v36, %v3796_v5  ;;  %v1448_v55 = vmul.f32 %v1416_v10, %v4560_v15  ;;  %v4582_v46 = vld [vmem:[#allocation17_spill] sm:$0xff] }
 0x224   : > { %v2662_v41 = vpop.eup %2661  ;;  %v1546_v62 = vmul.f32 %v2660_v20, %v1450_v2  ;;  %v1409_v35 = vsub.f32 %v3791_v38, %v3803_v4  ;;  %v1445_v61 = vmul.f32 %v1413_v7, %v4563_v17  ;;  %v1410_v48 = vsub.f32 %v3807_v37, %v3814_v42  ;;  %v4575_v37 = vld [vmem:[#allocation3_spill] sm:$0xff]  ;;  %v4576_v42 = vld [vmem:[#allocation4_spill] sm:$0xff]  ;;  %v4587_v22 = vld [vmem:[#allocation9_spill] sm:$0xff] }
 0x225   : > { %v2664_v57 = vpop.eup %2663  ;;  %1714 = vmatprep.subr.bf16.mxu0 %v1605_v18  ;;  %2426 = vmatprep.subr.bf16.mxu1 %v1605_v18  ;;  %v1543_v44 = vmul.f32 %v2662_v41, %v1447_v29  ;;  %v1446_v36 = vmul.f32 %v1414_v24, %v4566_v23  ;;  %v1407_v63 = vsub.f32 %v4572_v51, %v3540_v3  ;;  %v4586_v7 = vld [vmem:[#allocation15_spill] sm:$0xff]  ;;  %v4588_v24 = vld [vmem:[#allocation25_spill] sm:$0xff]  ;;  %v4590_v29 = vld [vmem:[#allocation22_spill] sm:$0xff] }
 0x226   : > { %v2666_v30 = vpop.eup %2665  ;;  %1715 = vmatpush1.bf16.msra.mxu0 %v1604_v39  ;;  %2434 = vmatpush1.bf16.msra.mxu1 %v1604_v39  ;;  %v1544_v5 = vmul.f32 %v2664_v57, %v1448_v55  ;;  %v1602_v15 = vpack.c.bf16 %v1548_v27, %v1546_v62  ;;  %v1443_v13 = vmul.f32 %v1411_v11, %v4567_v26  ;;  %v4578_v26 = vld [vmem:[#allocation28_spill] sm:$0xff]  ;;  %v4589_v39 = vld [vmem:[#allocation11_spill] sm:$0xff]  ;;  %v4592_v62 = vld [vmem:[#allocation33_spill] sm:$0xff] }
 0x227   : > { %v2668_v21 = vpop.eup %2667  ;;  %1716 = vmatprep.subr.bf16.mxu0 %v1603_v50  ;;  %2427 = vmatprep.subr.bf16.mxu1 %v1603_v50  ;;  %v1601_v38 = vpack.c.bf16 %v1545_v60, %v1543_v44  ;;  %v1541_v4 = vmul.f32 %v2666_v30, %v1445_v61  ;;  %v1408_v1 = vsub.f32 %v4574_v47, %v4573_v52  ;;  %v4591_v30 = vld [vmem:[#allocation6_spill] sm:$0xff]  ;;  %v4594_v44 = vld [vmem:[#allocation23_spill] sm:$0xff] }
 0x228   : > { %v2670_v32 = vpop.eup %2669  ;;  %v1444_v12 = vmul.f32 %v1412_v33, %v4568_v16  ;;  %v1542_v58 = vmul.f32 %v2668_v21, %v1446_v36  ;;  %v1405_v54 = vsub.f32 %v4576_v42, %v4575_v37  ;;  %v1441_v45 = vmul.f32 %v1409_v35, %v4577_v0  ;;  %v4581_v16 = vld [vmem:[#allocation20_spill] sm:$0xff]  ;;  %v4596_v36 = vld [vmem:[#allocation7_spill] sm:$0xff]  ;;  %v4600_v52 = vld [vmem:[#allocation26_spill] sm:$0xff] }
 0x229   : > { %v2672_v56 = vpop.eup %2671  ;;  %v1539_v3 = vmul.f32 %v2670_v32, %v1443_v13  ;;  %v1406_v19 = vsub.f32 %v4579_v59, %v4578_v26  ;;  %v1442_v8 = vmul.f32 %v1410_v48, %v4580_v49  ;;  %v1403_v34 = vsub.f32 %v4582_v46, %v4581_v16  ;;  %v4593_v35 = vld [vmem:[#allocation8_spill] sm:$0xff]  ;;  %v2469_v47 = vld [vmem:[%s4455_s2] sm:$0xff]   ;;  %v2472_v37 = vld [vmem:[%s4455_s2 + $0x38] sm:$0xff]  }
 0x22a   : > { %v2674_v17 = vpop.eup %2673  ;;  %1717 = vmatpush1.bf16.msra.mxu0 %v1602_v15  ;;  %2435 = vmatpush1.bf16.msra.mxu1 %v1602_v15  ;;  %v1540_v25 = vmul.f32 %v2672_v56, %v1444_v12  ;;  %v1600_v28 = vpack.c.bf16 %v1544_v5, %v1542_v58  ;;  %v1439_v43 = vmul.f32 %v1407_v63, %v4583_v9  ;;  %v4597_v15 = vld [vmem:[#allocation32_spill] sm:$0xff]  ;;  %v4602_v58 = vmov 0   ;;  %v2475_v0 = vld [vmem:[%s4455_s2 + $0x18] sm:$0xff]   ;;  %v2479_v59 = vld [vmem:[%s4455_s2 + $0x28] sm:$0xff]  }
 0x22b   : > { %v2676_v23 = vpop.eup %2675  ;;  %1718 = vmatprep.subr.bf16.mxu0 %v1601_v38  ;;  %2428 = vmatprep.subr.bf16.mxu1 %v1601_v38  ;;  %v1599_v11 = vpack.c.bf16 %v1541_v4, %v1539_v3  ;;  %v1537_v10 = vmul.f32 %v2674_v17, %v1441_v45  ;;  %v1404_v20 = vsub.f32 %v4585_v31, %v4584_v53  ;;  %v4598_v4 = vld [vmem:[#allocation14_spill] sm:$0xff]  ;;  %v4601_v12 = vld [vmem:[#allocation12_spill] sm:$0xff]  ;;  %v2476_v45 = vld [vmem:[%s4455_s2 + $0x48] sm:$0xff]  }
 0x22c   : > { %v1440_v6 = vmul.f32 %v1408_v1, %v4586_v7  ;;  %v1538_v18 = vmul.f32 %v2676_v23, %v1442_v8  ;;  %v1437_v41 = vmul.f32 %v1405_v54, %v4587_v22  ;;  %v1535_v2 = vmul.f32 %v4588_v24, %v1439_v43  ;;  %v4599_v17 = vld [vmem:[#allocation34_spill] sm:$0xff]  ;;  %v2470_v1 = vld [vmem:[%s4455_s2 + $0x30] sm:$0xff]   ;;  %v2471_v23 = vld [vmem:[%s4455_s2 + $0x8] sm:$0xff]  }
 0x22d   : > { %v1402_v27 = vsub.f32 %v3822_v14, %v3828_v40  ;;  %v1438_v57 = vmul.f32 %v1406_v19, %v4589_v39  ;;  %v1435_v33 = vmul.f32 %v1403_v34, %v4591_v30  ;;  %v1436_v61 = vmul.f32 %v1404_v20, %v4593_v35  ;;  %v4595_v14 = vld [vmem:[#allocation10_spill] sm:$0xff]  ;;  %v2473_v42 = vld [vmem:[%s4455_s2 + $0x10] sm:$0xff]   ;;  %v2480_v19 = vld [vmem:[%s4455_s2 + $0x58] sm:$0xff]  }
 0x22e   : > { %1719 = vmatpush1.bf16.msra.mxu0 %v1600_v28  ;;  %2436 = vmatpush1.bf16.msra.mxu1 %v1600_v28  ;;  %v1536_v50 = vmul.f32 %v4590_v29, %v1440_v6  ;;  %v1598_v60 = vpack.c.bf16 %v1540_v25, %v1538_v18  ;;  %v1597_v55 = vpack.c.bf16 %v1537_v10, %v1535_v2  ;;  %v2474_v54 = vld [vmem:[%s4455_s2 + $0x40] sm:$0xff]   ;;  %v2478_v26 = vld [vmem:[%s4455_s2 + $0x50] sm:$0xff]   ;;  %v2482_v8 = vld [vmem:[%s4455_s2 + $0x68] sm:$0xff]  }
 0x22f   : > { %1720 = vmatprep.subr.bf16.mxu0 %v1599_v11  ;;  %2429 = vmatprep.subr.bf16.mxu1 %v1599_v11  ;;  %v1533_v21 = vmul.f32 %v4592_v62, %v1437_v41  ;;  %v1534_v32 = vmul.f32 %v4594_v44, %v1438_v57  ;;  %v2678_v48 = vpop.eup %2677  ;;  %v1531_v40 = vmul.f32 %v4595_v14, %v1435_v33  ;;  %v2477_v3 = vld [vmem:[%s4455_s2 + $0x20] sm:$0xff]   ;;  %v2483_v25 = vld [vmem:[%s4455_s2 + $0x70] sm:$0xff]   ;;  %v2484_v28 = vld [vmem:[%s4455_s2 + $0x78] sm:$0xff]  }
 0x230   : > { %v1434_v5 = vmul.f32 %v1402_v27, %v4596_v36  ;;  %v1532_v56 = vmul.f32 %v4597_v15, %v1436_v61  ;;  %v2481_v49 = vld [vmem:[%s4455_s2 + $0x60] sm:$0xff]   ;;  %v2486_v46 = vld [vmem:[%s4455_s2 + $0x88] sm:$0xff]  }
 0x231   : > { %v1596_v51 = vpack.c.bf16 %v1536_v50, %v1534_v32  ;;  %v1595_v63 = vpack.c.bf16 %v1533_v21, %v1531_v40  ;;  %v2485_v16 = vld [vmem:[%s4455_s2 + $0x80] sm:$0xff]  }
 0x232   : > { %1721 = vmatpush1.bf16.msra.mxu0 %v1598_v60  ;;  %2437 = vmatpush1.bf16.msra.mxu1 %v1598_v60  ;;  %v1530_v13 = vmul.f32 %v2678_v48, %v1434_v5 }
 0x233   : > { %1722 = vmatprep.subr.bf16.mxu0 %v1597_v55  ;;  %2430 = vmatprep.subr.bf16.mxu1 %v1597_v55 }
 0x234   : > { %v1594_v38 = vpack.c.bf16 %v1532_v56, %v1530_v13 }
 0x236   : > { %1723 = vmatpush1.bf16.msra.mxu0 %v1596_v51  ;;  %2438 = vmatpush1.bf16.msra.mxu1 %v1596_v51 }
 0x237   : > { %1724 = vmatprep.subr.bf16.mxu0 %v1595_v63  ;;  %2431 = vmatprep.subr.bf16.mxu1 %v1595_v63 }
 0x23a   : > { %1725 = vmatpush1.bf16.msra.mxu0 %v1594_v38  ;;  %2439 = vmatpush1.bf16.msra.mxu1 %v1594_v38 }
 0x23b   : > { %1726 = vmatprep.subr.bf16.mxu0 %v4598_v4  ;;  %2432 = vmatprep.subr.bf16.mxu1 %v4598_v4 }
 0x23e   : > { %1727 = vmatpush1.bf16.msra.mxu0 %v4599_v17  ;;  %2440 = vmatpush1.bf16.msra.mxu1 %v4599_v17 }
 0x23f   : > { %1728 = vmatprep.subr.bf16.mxu0 %v4600_v52  ;;  %2433 = vmatprep.subr.bf16.mxu1 %v4600_v52 }
 0x242   : > { %1729 = vmatpush1.bf16.msra.mxu0 %v4601_v12  ;;  %2441 = vmatpush1.bf16.msra.mxu1 %v4601_v12 }
 0x245   : > { %1747 = vmatmul.mubr.bf16.vlgmr.msra.gmra.mxu0 %v2469_v47  ;;  %1807 = vmatmul.mubr.bf16.vlgmr.msra.gmra.mxu1 %v2470_v1 }
 0x246   : > { %1756 = vmatprep.mubr.bf16.mxu0 %v4602_v58  ;;  %1816 = vmatprep.mubr.bf16.mxu1 %v4602_v58 }
 0x24d   : > { %1757 = vmatmul.mubr.bf16.gmra.mxu0 %v2471_v23  ;;  %1817 = vmatmul.mubr.bf16.gmra.mxu1 %v2472_v37 }
 0x24e   : > { %1766 = vmatprep.mubr.bf16.mxu0 %v4602_v58  ;;  %1826 = vmatprep.mubr.bf16.mxu1 %v4602_v58 }
 0x255   : > { %1767 = vmatmul.mubr.bf16.gmra.mxu0 %v2473_v42  ;;  %1827 = vmatmul.mubr.bf16.gmra.mxu1 %v2474_v54 }
 0x256   : > { %1776 = vmatprep.mubr.bf16.mxu0 %v4602_v58  ;;  %1836 = vmatprep.mubr.bf16.mxu1 %v4602_v58 }
 0x25d   : > { %1777 = vmatmul.mubr.bf16.gmra.mxu0 %v2475_v0  ;;  %1837 = vmatmul.mubr.bf16.gmra.mxu1 %v2476_v45 }
 0x25e   : > { %1786 = vmatprep.mubr.bf16.mxu0 %v4602_v58  ;;  %1846 = vmatprep.mubr.bf16.mxu1 %v4602_v58 }
 0x265   : > { %1787 = vmatmul.mubr.bf16.gmra.mxu0 %v2477_v3  ;;  %1847 = vmatmul.mubr.bf16.gmra.mxu1 %v2478_v26 }
 0x266   : > { %1796 = vmatprep.mubr.bf16.mxu0 %v4602_v58  ;;  %1856 = vmatprep.mubr.bf16.mxu1 %v4602_v58 }
 0x26d   : > { %1797 = vmatmul.mubr.bf16.gmra.mxu0 %v2479_v59  ;;  %1857 = vmatmul.mubr.bf16.gmra.mxu1 %v2480_v19 }
 0x26e   : > { %1866 = vmatprep.mubr.bf16.mxu1 %v4602_v58 }
 0x275   : > { %1867 = vmatmul.mubr.bf16.gmra.mxu1 %v2481_v49 }
 0x276   : > { %1876 = vmatprep.mubr.bf16.mxu1 %v4602_v58 }
 0x27d   : > { %1877 = vmatmul.mubr.bf16.gmra.mxu1 %v2482_v8 }
 0x27e   : > { %1886 = vmatprep.mubr.bf16.mxu1 %v4602_v58 }
 0x285   : > { %1887 = vmatmul.mubr.bf16.gmra.mxu1 %v2483_v25 }
 0x286   : > { %1896 = vmatprep.mubr.bf16.mxu1 %v4602_v58 }
 0x28d   : > { %1897 = vmatmul.mubr.bf16.gmra.mxu1 %v2484_v28 }
 0x28e   : > { %1906 = vmatprep.mubr.bf16.mxu1 %v4602_v58 }
 0x295   : > { %1907 = vmatmul.mubr.bf16.gmra.mxu1 %v2485_v16 }
 0x296   : > { %1916 = vmatprep.mubr.bf16.mxu1 %v4602_v58 }
 0x29d   : > { %1917 = vmatmul.mubr.bf16.gmra.mxu1 %v2486_v46 }
 0x305   : > { %v1748_v34 = vpop.f32.mrf.mxu0  ;;  %v1808_v9 = vpop.f32.mrf.mxu1 }
 0x306   : > { %1932 = vrot.lane.b32.xlu0 %v1748_v34, %s2688_s8 }
 0x307   : > { %v1750_v43 = vpop.f32.mrf.mxu0  ;;  %v1810_v11 = vpop.f32.mrf.mxu1 }
 0x309   : > { %v1752_v10 = vpop.f32.mrf.mxu0  ;;  %v1812_v53 = vpop.f32.mrf.mxu1 }
 0x30a   : > { %2077 = vrot.lane.b32.xlu0 %v1808_v9, %s2689_s9  ;;  %1934 = vrot.lane.b32.xlu1 %v1752_v10, %s2688_s8 }
 0x30b   : > { %v1754_v31 = vpop.f32.mrf.mxu0  ;;  %v1814_v20 = vpop.f32.mrf.mxu1 }
 0x30d   : > { %v1758_v7 = vpop.f32.mrf.mxu0  ;;  %v1818_v6 = vpop.f32.mrf.mxu1 }
 0x30e   : > { %1940 = vrot.lane.b32.xlu0 %v1750_v43, %s2688_s8  ;;  %2079 = vrot.lane.b32.xlu1 %v1812_v53, %s2689_s9  ;;  %v1927_v53 = vlaneseq }
 0x30f   : > { %v1760_v18 = vpop.f32.mrf.mxu0  ;;  %v1820_v22 = vpop.f32.mrf.mxu1 }
 0x311   : > { %v1762_v41 = vpop.f32.mrf.mxu0  ;;  %v1822_v24 = vpop.f32.mrf.mxu1 }
 0x312   : > { %2085 = vrot.lane.b32.xlu0 %v1810_v11, %s2689_s9  ;;  %1942 = vrot.lane.b32.xlu1 %v1754_v31, %s2688_s8 }
 0x313   : > { %v1764_v2 = vpop.f32.mrf.mxu0  ;;  %v1824_v27 = vpop.f32.mrf.mxu1 }
 0x315   : > { %v1768_v39 = vpop.f32.mrf.mxu0  ;;  %v3997_v57 = vpop.f32.mrf.mxu1 }
 0x316   : > { %2087 = vrot.lane.b32.xlu1 %v1814_v20, %s2689_s9  ;;  %1936 = vrot.lane.b32.xlu0 %v1758_v7, %s2688_s8 }
 0x317   : > { %v1770_v29 = vpop.f32.mrf.mxu0  ;;  %v4001_v50 = vpop.f32.mrf.mxu1 }
 0x319   : > { %v1772_v60 = vpop.f32.mrf.mxu0  ;;  %v4003_v30 = vpop.f32.mrf.mxu1 }
 0x31a   : > { %2081 = vrot.lane.b32.xlu0 %v1818_v6, %s2689_s9  ;;  %1938 = vrot.lane.b32.xlu1 %v1762_v41, %s2688_s8  ;;  %v4038_v6 = vand.u32 127, %v1927_v53 }
 0x31b   : > { %v4007_v33 = vpop.f32.mrf.mxu1  ;;  %v1774_v55 = vpop.f32.mrf.mxu0 }
 0x31c   : > { %vm1948_vm1 = vcmp.lt.s32.totalorder %v4038_v6, 17  ;;  %vm2093_vm2 = vcmp.lt.s32.totalorder %v4038_v6, 1  ;;  %vm1957_vm3 = vcmp.ge.s32.totalorder %v4038_v6, 16  ;;  %vm1999_vm6 = vcmp.lt.s32.totalorder %v4038_v6, 16 }
 0x31d   : > { %v4009_v62 = vpop.f32.mrf.mxu1  ;;  %v1778_v35 = vpop.f32.mrf.mxu0  ;;  %vm2044_vm9 = vcmp.lt.s32.totalorder %v4038_v6, 15  ;;  %vm2146_vm12 = vcmp.lt.s32.totalorder %v4038_v6, 127  ;;  %vm2191_vm13 = vcmp.lt.s32.totalorder %v4038_v6, 113  ;;  %vm2240_vm15 = vcmp.lt.s32.totalorder %v4038_v6, 112 }
 0x31e   : > { %1944 = vrot.lane.b32.xlu0 %v1760_v18, %s2688_s8  ;;  %2083 = vrot.lane.b32.xlu1 %v1822_v24, %s2689_s9  ;;  %vm2285_vm0 = vcmp.lt.s32.totalorder %v4038_v6, 111 }
 0x31f   : > { %v4013_v21 = vpop.f32.mrf.mxu1  ;;  %v1780_v32 = vpop.f32.mrf.mxu0 }
 0x321   : > { %v4015_v61 = vpop.f32.mrf.mxu1  ;;  %v1782_v40 = vpop.f32.mrf.mxu0 }
 0x322   : > { %2089 = vrot.lane.b32.xlu0 %v1820_v22, %s2689_s9  ;;  %1946 = vrot.lane.b32.xlu1 %v1764_v2, %s2688_s8 }
 0x323   : > { %v4019_v44 = vpop.f32.mrf.mxu1  ;;  %v1784_v15 = vpop.f32.mrf.mxu0 }
 0x325   : > { %v1848_v48 = vpop.f32.mrf.mxu1  ;;  %v1788_v63 = vpop.f32.mrf.mxu0 }
 0x326   : > { %2091 = vrot.lane.b32.xlu1 %v1824_v27, %s2689_s9  ;;  %1983 = vrot.lane.b32.xlu0 %v1768_v39, %s2690_s10 }
 0x327   : > { %v1850_v14 = vpop.f32.mrf.mxu1  ;;  %v1790_v4 = vpop.f32.mrf.mxu0 }
 0x329   : > { %v1852_v36 = vpop.f32.mrf.mxu1  ;;  %v1792_v47 = vpop.f32.mrf.mxu0 }
 0x32a   : > { %1991 = vrot.lane.b32.xlu0 %v1770_v29, %s2690_s10  ;;  %1985 = vrot.lane.b32.xlu1 %v1772_v60, %s2690_s10 }
 0x32b   : > { %v1854_v5 = vpop.f32.mrf.mxu1  ;;  %v1794_v23 = vpop.f32.mrf.mxu0 }
 0x32d   : > { %v1858_v56 = vpop.f32.mrf.mxu1  ;;  %v1798_v42 = vpop.f32.mrf.mxu0 }
 0x32e   : > { %1993 = vrot.lane.b32.xlu1 %v1774_v55, %s2690_s10  ;;  %1987 = vrot.lane.b32.xlu0 %v1778_v35, %s2690_s10 }
 0x32f   : > { %v1860_v51 = vpop.f32.mrf.mxu1  ;;  %v1800_v0 = vpop.f32.mrf.mxu0 }
 0x331   : > { %v1862_v13 = vpop.f32.mrf.mxu1  ;;  %v1802_v3 = vpop.f32.mrf.mxu0 }
 0x332   : > { %1995 = vrot.lane.b32.xlu0 %v1780_v32, %s2690_s10  ;;  %1989 = vrot.lane.b32.xlu1 %v1782_v40, %s2690_s10 }
 0x333   : > { %v1864_v38 = vpop.f32.mrf.mxu1  ;;  %v1804_v19 = vpop.f32.mrf.mxu0 }
 0x335   : > { %v1868_v17 = vpop.f32.mrf.mxu1 }
 0x336   : > { %1997 = vrot.lane.b32.xlu1 %v1784_v15, %s2690_s10  ;;  %2028 = vrot.lane.b32.xlu0 %v1788_v63, %s2691_s11 }
 0x337   : > { %v1870_v52 = vpop.f32.mrf.mxu1 }
 0x339   : > { %v1872_v1 = vpop.f32.mrf.mxu1 }
 0x33a   : > { %2130 = vrot.lane.b32.xlu0 %v1848_v48, %s2692_s12  ;;  %2030 = vrot.lane.b32.xlu1 %v1792_v47, %s2691_s11 }
 0x33b   : > { %v1874_v12 = vpop.f32.mrf.mxu1 }
 0x33d   : > { %v1878_v58 = vpop.f32.mrf.mxu1 }
 0x33e   : > { %2036 = vrot.lane.b32.xlu0 %v1790_v4, %s2691_s11  ;;  %2132 = vrot.lane.b32.xlu1 %v1852_v36, %s2692_s12  ;;  %v4071_v4 = vadd.s32 128, %v4038_v6 }
 0x33f   : > { %v1880_v37 = vpop.f32.mrf.mxu1 }
 0x340   : > { %vm2201_vm14 = vcmp.lt.s32.totalorder %v4071_v4, 240 }
 0x341   : > { %v1882_v54 = vpop.f32.mrf.mxu1 }
 0x342   : > { %2138 = vrot.lane.b32.xlu0 %v1850_v14, %s2692_s12  ;;  %2038 = vrot.lane.b32.xlu1 %v1794_v23, %s2691_s11 }
 0x343   : > { %v1884_v45 = vpop.f32.mrf.mxu1 }
 0x345   : > { %v1888_v26 = vpop.f32.mrf.mxu1 }
 0x346   : > { %2140 = vrot.lane.b32.xlu1 %v1854_v5, %s2692_s12  ;;  %2032 = vrot.lane.b32.xlu0 %v1798_v42, %s2691_s11 }
 0x347   : > { %v1890_v59 = vpop.f32.mrf.mxu1 }
 0x349   : > { %v1892_v49 = vpop.f32.mrf.mxu1 }
 0x34a   : > { %2134 = vrot.lane.b32.xlu0 %v1858_v56, %s2692_s12  ;;  %2034 = vrot.lane.b32.xlu1 %v1802_v3, %s2691_s11 }
 0x34b   : > { %v1894_v8 = vpop.f32.mrf.mxu1 }
 0x34d   : > { %v1898_v25 = vpop.f32.mrf.mxu1 }
 0x34e   : > { %2040 = vrot.lane.b32.xlu0 %v1800_v0, %s2691_s11  ;;  %2136 = vrot.lane.b32.xlu1 %v1862_v13, %s2692_s12 }
 0x34f   : > { %v1900_v28 = vpop.f32.mrf.mxu1 }
 0x351   : > { %v1902_v16 = vpop.f32.mrf.mxu1 }
 0x352   : > { %2142 = vrot.lane.b32.xlu0 %v1860_v51, %s2692_s12  ;;  %2042 = vrot.lane.b32.xlu1 %v1804_v19, %s2691_s11 }
 0x353   : > { %v1904_v46 = vpop.f32.mrf.mxu1 }
 0x355   : > { %v1908_v34 = vpop.f32.mrf.mxu1 }
 0x356   : > { %2175 = vrot.lane.b32.xlu0 %v1868_v17, %s2693_s13  ;;  %2144 = vrot.lane.b32.xlu1 %v1864_v38, %s2692_s12  ;;  %v1930_v17 = vand.u32 15, %v4038_v6 }
 0x357   : > { %v1910_v9 = vpop.f32.mrf.mxu1 }
 0x358   : > { %vm4088_vm4 = vcmp.ge.s32.totalorder %v1930_v17, 1  ;;  %vm4155_vm8 = vcmp.le.s32.totalorder %v1930_v17, 14 }
 0x359   : > { %v1912_v43 = vpop.f32.mrf.mxu1  ;;  %vm4109_vm7 = vmand %vm1957_vm3, %vm4088_vm4 }
 0x35a   : > { %2183 = vrot.lane.b32.xlu0 %v1870_v52, %s2693_s13  ;;  %2177 = vrot.lane.b32.xlu1 %v1872_v1, %s2693_s13  ;;  %vm4168_vm11 = vmand %vm1957_vm3, %vm4155_vm8 }
 0x35b   : > { %v1914_v11 = vpop.f32.mrf.mxu1 }
 0x35d   : > { %v1918_v31 = vpop.f32.mrf.mxu1 }
 0x35e   : > { %2179 = vrot.lane.b32.xlu0 %v1878_v58, %s2693_s13  ;;  %2185 = vrot.lane.b32.xlu1 %v1874_v12, %s2693_s13 }
 0x35f   : > { %v1920_v18 = vpop.f32.mrf.mxu1 }
 0x361   : > { %v1922_v27 = vpop.f32.mrf.mxu1 }
 0x362   : > { %2187 = vrot.lane.b32.xlu0 %v1880_v37, %s2693_s13  ;;  %2181 = vrot.lane.b32.xlu1 %v1882_v54, %s2693_s13  ;;  %v1931_v37 = vand.u32 15, %v4071_v4 }
 0x363   : > { %v1924_v48 = vpop.f32.mrf.mxu1 }
 0x364   : > { %vm4100_vm5 = vcmp.ge.s32.totalorder %v1931_v37, 1  ;;  %vm4160_vm10 = vcmp.le.s32.totalorder %v1931_v37, 14 }
 0x366   : > { %2224 = vrot.lane.b32.xlu0 %v1888_v26, %s2694_s14  ;;  %2189 = vrot.lane.b32.xlu1 %v1884_v45, %s2693_s13 }
 0x36a   : > { %2232 = vrot.lane.b32.xlu0 %v1890_v59, %s2694_s14  ;;  %2226 = vrot.lane.b32.xlu1 %v1892_v49, %s2694_s14 }
 0x36e   : > { %2228 = vrot.lane.b32.xlu0 %v1898_v25, %s2694_s14  ;;  %2234 = vrot.lane.b32.xlu1 %v1894_v8, %s2694_s14 }
 0x372   : > { %2236 = vrot.lane.b32.xlu0 %v1900_v28, %s2694_s14  ;;  %2230 = vrot.lane.b32.xlu1 %v1902_v16, %s2694_s14 }
 0x376   : > { %2269 = vrot.lane.b32.xlu0 %v1908_v34, %s2695_s15  ;;  %2238 = vrot.lane.b32.xlu1 %v1904_v46, %s2694_s14 }
 0x378   : > { %v1933_v10 = vpop.permute.xlu0 %1932 }
 0x37a   : > { %2277 = vrot.lane.b32.xlu0 %v1910_v9, %s2695_s15  ;;  %2271 = vrot.lane.b32.xlu1 %v1912_v43, %s2695_s15 }
 0x37c   : > { %v2078_v20 = vpop.permute.xlu0 %2077  ;;  %v1935_v7 = vpop.permute.xlu1 %1934 }
 0x37e   : > { %2273 = vrot.lane.b32.xlu0 %v1918_v31, %s2695_s15  ;;  %2279 = vrot.lane.b32.xlu1 %v1914_v11, %s2695_s15 }
 0x380   : > { %v1941_v22 = vpop.permute.xlu0 %1940  ;;  %v2080_v41 = vpop.permute.xlu1 %2079 }
 0x381   : > { %v1949_v24 = vsel %vm1948_vm1, %v1933_v10, %v1941_v22  ;;  %v1953_v2 = vsel %vm1948_vm1, %v1941_v22, %v1933_v10 }
 0x382   : > { %2281 = vrot.lane.b32.xlu0 %v1920_v18, %s2695_s15  ;;  %2275 = vrot.lane.b32.xlu1 %v1922_v27, %s2695_s15  ;;  %v1968_v8 = vsel %vm4100_vm5, %v1949_v24, 0.0  ;;  %v1967_v16 = vsel %vm4109_vm7, %v1953_v2, 0.0 }
 0x384   : > { %v2086_v39 = vpop.permute.xlu0 %2085  ;;  %v1943_v29 = vpop.permute.xlu1 %1942 }
 0x385   : > { %v4048_v60 = vsel %vm2093_vm2, %v2078_v20, %v2086_v39  ;;  %v4052_v55 = vsel %vm2093_vm2, %v2086_v39, %v2078_v20  ;;  %v1950_v35 = vsel %vm1948_vm1, %v1935_v7, %v1943_v29  ;;  %v1954_v32 = vsel %vm1948_vm1, %v1943_v29, %v1935_v7 }
 0x386   : > { %2283 = vrot.lane.b32.xlu1 %v1924_v48, %s2695_s15  ;;  %v1970_v10 = vsel %vm4100_vm5, %v1950_v35, 0.0  ;;  %v1969_v20 = vsel %vm4109_vm7, %v1954_v32, 0.0 }
 0x388   : > { %v2088_v14 = vpop.permute.xlu1 %2087  ;;  %v1937_v40 = vpop.permute.xlu0 %1936 }
 0x389   : > { %v4060_v36 = vsel %vm2093_vm2, %v2080_v41, %v2088_v14  ;;  %v4064_v5 = vsel %vm2093_vm2, %v2088_v14, %v2080_v41 }
 0x38c   : > { %v2082_v15 = vpop.permute.xlu0 %2081  ;;  %v1939_v56 = vpop.permute.xlu1 %1938 }
 0x390   : > { %v1945_v51 = vpop.permute.xlu0 %1944  ;;  %v2084_v63 = vpop.permute.xlu1 %2083 }
 0x391   : > { %v1951_v13 = vsel %vm1948_vm1, %v1937_v40, %v1945_v51  ;;  %v1955_v38 = vsel %vm1948_vm1, %v1945_v51, %v1937_v40 }
 0x392   : > { %v1972_v2 = vsel %vm4100_vm5, %v1951_v13, 0.0  ;;  %v1971_v29 = vsel %vm4109_vm7, %v1955_v38, 0.0 }
 0x394   : > { %v2090_v52 = vpop.permute.xlu0 %2089  ;;  %v1947_v47 = vpop.permute.xlu1 %1946 }
 0x395   : > { %v4076_v1 = vsel %vm2093_vm2, %v2082_v15, %v2090_v52  ;;  %v4080_v12 = vsel %vm2093_vm2, %v2090_v52, %v2082_v15  ;;  %v1952_v58 = vsel %vm1948_vm1, %v1939_v56, %v1947_v47  ;;  %v1956_v23 = vsel %vm1948_vm1, %v1947_v47, %v1939_v56  ;;  %vm4291_vm1 = vmand %vm2201_vm14, %vm4100_vm5 }
 0x396   : > { %v1974_v15 = vsel %vm4100_vm5, %v1952_v58, 0.0 }
 0x398   : > { %v2092_v54 = vpop.permute.xlu1 %2091  ;;  %v1984_v0 = vpop.permute.xlu0 %1983 }
 0x399   : > { %v4094_v45 = vsel %vm2093_vm2, %v2084_v63, %v2092_v54  ;;  %v4098_v3 = vsel %vm2093_vm2, %v2092_v54, %v2084_v63  ;;  %v1973_v63 = vsel %vm4109_vm7, %v1956_v23, 0.0  ;;  %vm4353_vm2 = vmand %vm2201_vm14, %vm4160_vm10 }
 0x39c   : > { %v1992_v19 = vpop.permute.xlu0 %1991  ;;  %v1986_v49 = vpop.permute.xlu1 %1985 }
 0x39d   : > { %v2000_v25 = vsel %vm1999_vm6, %v1984_v0, %v1992_v19  ;;  %v2004_v28 = vsel %vm1999_vm6, %v1992_v19, %v1984_v0 }
 0x39e   : > { %v2012_v46 = vsel %vm1957_vm3, %v2004_v28, 0.0  ;;  %v2021_v34 = vadd.f32 %v2000_v25, %v1968_v8 }
 0x39f   : > { %v2020_v9 = vadd.f32 %v2012_v46, %v1967_v16  ;;  %v2106_v16 = vsel %vm4088_vm4, %v4052_v55, 0.0  ;;  %v2107_v46 = vsel %vm4100_vm5, %v4048_v60, 0.0 }
 0x3a0   : > { %v1994_v43 = vpop.permute.xlu1 %1993  ;;  %v1988_v11 = vpop.permute.xlu0 %1987 }
 0x3a1   : > { %v2001_v53 = vsel %vm1999_vm6, %v1986_v49, %v1994_v43  ;;  %v2005_v31 = vsel %vm1999_vm6, %v1994_v43, %v1986_v49 }
 0x3a2   : > { %v2014_v7 = vsel %vm1957_vm3, %v2005_v31, 0.0  ;;  %v2023_v18 = vadd.f32 %v2001_v53, %v1970_v10 }
 0x3a3   : > { %v2022_v22 = vadd.f32 %v2014_v7, %v1969_v20 }
 0x3a4   : > { %v1996_v41 = vpop.permute.xlu0 %1995  ;;  %v1990_v24 = vpop.permute.xlu1 %1989 }
 0x3a5   : > { %v2002_v27 = vsel %vm1999_vm6, %v1988_v11, %v1996_v41  ;;  %v2006_v39 = vsel %vm1999_vm6, %v1996_v41, %v1988_v11 }
 0x3a6   : > { %v2016_v35 = vsel %vm1957_vm3, %v2006_v39, 0.0  ;;  %v2025_v32 = vadd.f32 %v2002_v27, %v1972_v2  ;;  %v2109_v2 = vsel %vm4100_vm5, %v4060_v36, 0.0 }
 0x3a7   : > { %v2024_v48 = vadd.f32 %v2016_v35, %v1971_v29 }
 0x3a8   : > { %v1998_v14 = vpop.permute.xlu1 %1997  ;;  %v2029_v40 = vpop.permute.xlu0 %2028 }
 0x3a9   : > { %v2003_v56 = vsel %vm1999_vm6, %v1990_v24, %v1998_v14  ;;  %v2007_v51 = vsel %vm1999_vm6, %v1998_v14, %v1990_v24  ;;  %v2108_v24 = vsel %vm4088_vm4, %v4064_v5, 0.0 }
 0x3aa   : > { %v2018_v13 = vsel %vm1957_vm3, %v2007_v51, 0.0  ;;  %v2027_v38 = vadd.f32 %v2003_v56, %v1974_v15  ;;  %v2110_v51 = vsel %vm4088_vm4, %v4080_v12, 0.0 }
 0x3ab   : > { %v2026_v52 = vadd.f32 %v2018_v13, %v1973_v63  ;;  %v2111_v63 = vsel %vm4100_vm5, %v4076_v1, 0.0 }
 0x3ac   : > { %v4153_v47 = vpop.permute.xlu0 %2130  ;;  %v2031_v54 = vpop.permute.xlu1 %2030 }
 0x3b0   : > { %v2037_v59 = vpop.permute.xlu0 %2036  ;;  %v4172_v19 = vpop.permute.xlu1 %2132 }
 0x3b1   : > { %v2045_v17 = vsel %vm2044_vm9, %v2029_v40, %v2037_v59  ;;  %v2049_v37 = vsel %vm2044_vm9, %v2037_v59, %v2029_v40 }
 0x3b2   : > { %v2061_v49 = vsel %vm4168_vm11, %v2049_v37, 0.0  ;;  %v2062_v8 = vsel %vm4160_vm10, %v2045_v17, 0.0 }
 0x3b3   : > { %v2069_v25 = vadd.f32 %v2061_v49, %v2020_v9  ;;  %v2070_v28 = vadd.f32 %v2062_v8, %v2021_v34 }
 0x3b4   : > { %v2139_v43 = vpop.permute.xlu0 %2138  ;;  %v2039_v11 = vpop.permute.xlu1 %2038 }
 0x3b5   : > { %v2114_v10 = vadd.f32 %v2106_v16, %v2069_v25  ;;  %v2115_v53 = vadd.f32 %v2107_v46, %v2070_v28  ;;  %v2046_v31 = vsel %vm2044_vm9, %v2031_v54, %v2039_v11  ;;  %v2050_v20 = vsel %vm2044_vm9, %v2039_v11, %v2031_v54 }
 0x3b6   : > { %v2063_v34 = vsel %vm4168_vm11, %v2050_v20, 0.0  ;;  %v2064_v55 = vsel %vm4160_vm10, %v2046_v31, 0.0  ;;  %v2112_v28 = vsel %vm4088_vm4, %v4098_v3, 0.0  ;;  %v2113_v16 = vsel %vm4100_vm5, %v4094_v45, 0.0 }
 0x3b7   : > { %v2071_v9 = vadd.f32 %v2063_v34, %v2022_v22  ;;  %v2072_v7 = vadd.f32 %v2064_v55, %v2023_v18  ;;  %v2147_v45 = vsel %vm2146_vm12, %v4153_v47, %v2139_v43 }
 0x3b8   : > { %v2141_v41 = vpop.permute.xlu1 %2140  ;;  %v2033_v60 = vpop.permute.xlu0 %2032 }
 0x3b9   : > { %v2116_v27 = vadd.f32 %v2108_v24, %v2071_v9  ;;  %v2117_v39 = vadd.f32 %v2109_v2, %v2072_v7  ;;  %v2122_v24 = vadd.f32 %v2114_v10, %v3997_v57  ;;  %v2123_v2 = vadd.f32 %v2115_v53, %v4001_v50 }
 0x3ba   : > { %v2148_v50 = vsel %vm2146_vm12, %v4172_v19, %v2141_v41 }
 0x3bb   : > { %v2125_v57 = vadd.f32 %v2117_v39, %v4007_v33 }
 0x3bc   : > { %v2135_v29 = vpop.permute.xlu0 %2134  ;;  %v2035_v35 = vpop.permute.xlu1 %2034 }
 0x3c0   : > { %v2041_v14 = vpop.permute.xlu0 %2040  ;;  %v4202_v40 = vpop.permute.xlu1 %2136 }
 0x3c1   : > { %v2047_v18 = vsel %vm2044_vm9, %v2033_v60, %v2041_v14  ;;  %v2051_v22 = vsel %vm2044_vm9, %v2041_v14, %v2033_v60  ;;  %v2151_v60 = vsel %vm2146_vm12, %v2139_v43, %v4153_v47  ;;  %v2124_v47 = vadd.f32 %v2116_v27, %v4003_v30 }
 0x3c2   : > { %v2065_v5 = vsel %vm4168_vm11, %v2051_v22, 0.0  ;;  %v2066_v15 = vsel %vm4160_vm10, %v2047_v18, 0.0  ;;  %v2159_v18 = vsel %vm4155_vm8, %v2147_v45, 0.0  ;;  %v2160_v22 = vsel %vm4160_vm10, %v2151_v60, 0.0 }
 0x3c3   : > { %v2073_v36 = vadd.f32 %v2065_v5, %v2024_v48  ;;  %v2074_v56 = vadd.f32 %v2066_v15, %v2025_v32  ;;  %v2152_v43 = vsel %vm2146_vm12, %v2141_v41, %v4172_v19  ;;  %v2167_v10 = vadd.f32 %v2159_v18, %v2122_v24 }
 0x3c4   : > { %v2143_v13 = vpop.permute.xlu0 %2142  ;;  %v2043_v54 = vpop.permute.xlu1 %2042  ;;  %v2168_v53 = vadd.f32 %v2160_v22, %v2123_v2  ;;  %v2161_v19 = vsel %vm4155_vm8, %v2148_v50, 0.0  ;;  %v2162_v41 = vsel %vm4160_vm10, %v2152_v43, 0.0 }
 0x3c5   : > { %v2118_v59 = vadd.f32 %v2110_v51, %v2073_v36  ;;  %v2119_v17 = vadd.f32 %v2111_v63, %v2074_v56  ;;  %v2048_v37 = vsel %vm2044_vm9, %v2035_v35, %v2043_v54  ;;  %v2052_v49 = vsel %vm2044_vm9, %v2043_v54, %v2035_v35 }
 0x3c6   : > { %v2067_v32 = vsel %vm4168_vm11, %v2052_v49, 0.0  ;;  %v2068_v12 = vsel %vm4160_vm10, %v2048_v37, 0.0  ;;  %v2149_v33 = vsel %vm2146_vm12, %v2135_v29, %v2143_v13  ;;  %v2153_v27 = vsel %vm2146_vm12, %v2143_v13, %v2135_v29 }
 0x3c7   : > { %v2075_v48 = vadd.f32 %v2067_v32, %v2026_v52  ;;  %v2076_v8 = vadd.f32 %v2068_v12, %v2027_v38  ;;  %v2126_v5 = vadd.f32 %v2118_v59, %v4009_v62  ;;  %v2127_v30 = vadd.f32 %v2119_v17, %v4013_v21 }
 0x3c8   : > { %v2176_v25 = vpop.permute.xlu0 %2175  ;;  %v2145_v1 = vpop.permute.xlu1 %2144  ;;  %v2169_v36 = vadd.f32 %v2161_v19, %v2124_v47  ;;  %v2170_v56 = vadd.f32 %v2162_v41, %v2125_v57  ;;  %v2163_v63 = vsel %vm4155_vm8, %v2149_v33, 0.0  ;;  %v2164_v13 = vsel %vm4160_vm10, %v2153_v27, 0.0 }
 0x3c9   : > { %v2120_v46 = vadd.f32 %v2112_v28, %v2075_v48  ;;  %v4232_v11 = vadd.f32 %v2113_v16, %v2076_v8  ;;  %v4302_v51 = vsel %vm2146_vm12, %v4202_v40, %v2145_v1  ;;  %v4313_v54 = vsel %vm2146_vm12, %v2145_v1, %v4202_v40 }
 0x3ca   : > { %v2171_v17 = vadd.f32 %v2163_v63, %v2126_v5  ;;  %v2172_v37 = vadd.f32 %v2164_v13, %v2127_v30  ;;  %v2165_v40 = vsel %vm4155_vm8, %v4302_v51, 0.0  ;;  %v2166_v16 = vsel %vm4160_vm10, %v4313_v54, 0.0 }
 0x3cb   : > { %v2128_v28 = vadd.f32 %v2120_v46, %v4015_v61 }
 0x3cc   : > { %v2184_v23 = vpop.permute.xlu0 %2183  ;;  %v2178_v31 = vpop.permute.xlu1 %2177 }
 0x3cd   : > { %v2192_v21 = vsel %vm2191_vm13, %v2176_v25, %v2184_v23  ;;  %v2196_v29 = vsel %vm2191_vm13, %v2184_v23, %v2176_v25 }
 0x3ce   : > { %v2208_v49 = vsel %vm4088_vm4, %v2192_v21, 0.0  ;;  %v2209_v32 = vsel %vm4291_vm1, %v2196_v29, 0.0 }
 0x3cf   : > { %v2216_v45 = vadd.f32 %v2208_v49, %v2167_v10  ;;  %v2217_v60 = vadd.f32 %v2209_v32, %v2168_v53 }
 0x3d0   : > { %v4234_v20 = vpop.permute.xlu0 %2179  ;;  %v2186_v34 = vpop.permute.xlu1 %2185 }
 0x3d1   : > { %v2193_v26 = vsel %vm2191_vm13, %v2178_v31, %v2186_v34  ;;  %v2197_v8 = vsel %vm2191_vm13, %v2186_v34, %v2178_v31  ;;  %v2129_v34 = vadd.f32 %v4232_v11, %v4019_v44 }
 0x3d2   : > { %v2210_v25 = vsel %vm4088_vm4, %v2193_v26, 0.0 }
 0x3d3   : > { %v2218_v44 = vadd.f32 %v2210_v25, %v2169_v36 }
 0x3d4   : > { %v4236_v52 = vpop.permute.xlu0 %2187  ;;  %v4238_v38 = vpop.permute.xlu1 %2181 }
 0x3d5   : > { %v2194_v1 = vsel %vm2191_vm13, %v4234_v20, %v4236_v52  ;;  %v2198_v11 = vsel %vm2191_vm13, %v4236_v52, %v4234_v20 }
 0x3d6   : > { %v2213_v53 = vsel %vm4291_vm1, %v2198_v11, 0.0 }
 0x3d7   : > { %v2221_v26 = vadd.f32 %v2213_v53, %v2172_v37 }
 0x3d8   : > { %v2225_v55 = vpop.permute.xlu0 %2224  ;;  %v4240_v9 = vpop.permute.xlu1 %2189 }
 0x3d9   : > { %v2195_v30 = vsel %vm2191_vm13, %v4238_v38, %v4240_v9  ;;  %v2199_v33 = vsel %vm2191_vm13, %v4240_v9, %v4238_v38 }
 0x3dc   : > { %v2233_v3 = vpop.permute.xlu0 %2232  ;;  %v4243_v7 = vpop.permute.xlu1 %2226 }
 0x3dd   : > { %v2245_v59 = vsel %vm2240_vm15, %v2233_v3, %v2225_v55  ;;  %v2241_v23 = vsel %vm2240_vm15, %v2225_v55, %v2233_v3  ;;  %v2211_v55 = vsel %vm4291_vm1, %v2197_v8, 0.0  ;;  %v2212_v3 = vsel %vm4088_vm4, %v2194_v1, 0.0 }
 0x3de   : > { %v2254_v31 = vsel %vm2201_vm14, %v2245_v59, 0.0  ;;  %v2261_v2 = vadd.f32 %v2241_v23, %v2216_v45  ;;  %v2219_v43 = vadd.f32 %v2211_v55, %v2170_v56  ;;  %v2220_v5 = vadd.f32 %v2212_v3, %v2171_v17 }
 0x3df   : > { %v2262_v18 = vadd.f32 %v2254_v31, %v2217_v60  ;;  %v2214_v59 = vsel %vm4088_vm4, %v2195_v30, 0.0  ;;  %v2215_v17 = vsel %vm4291_vm1, %v2199_v33, 0.0 }
 0x3e0   : > { %v4253_v35 = vpop.permute.xlu0 %2228  ;;  %v4255_v14 = vpop.permute.xlu1 %2234 }
 0x3e1   : > { %v2246_v61 = vsel %vm2240_vm15, %v4255_v14, %v4243_v7  ;;  %v2242_v57 = vsel %vm2240_vm15, %v4243_v7, %v4255_v14 }
 0x3e2   : > { %v2256_v20 = vsel %vm2201_vm14, %v2246_v61, 0.0  ;;  %v2263_v41 = vadd.f32 %v2242_v57, %v2218_v44 }
 0x3e3   : > { %v2264_v21 = vadd.f32 %v2256_v20, %v2219_v43 }
 0x3e4   : > { %v4279_v39 = vpop.permute.xlu0 %2236  ;;  %v4281_v15 = vpop.permute.xlu1 %2230 }
 0x3e5   : > { %v2247_v7 = vsel %vm2240_vm15, %v4279_v39, %v4253_v35  ;;  %v2243_v56 = vsel %vm2240_vm15, %v4253_v35, %v4279_v39  ;;  %v2173_v35 = vadd.f32 %v2165_v40, %v2128_v28  ;;  %v2174_v39 = vadd.f32 %v2166_v16, %v2129_v34 }
 0x3e6   : > { %v2258_v38 = vsel %vm2201_vm14, %v2247_v7, 0.0 }
 0x3e7   : > { %v2266_v8 = vadd.f32 %v2258_v38, %v2221_v26  ;;  %v2222_v28 = vadd.f32 %v2214_v59, %v2173_v35  ;;  %v2223_v16 = vadd.f32 %v2215_v17, %v2174_v39 }
 0x3e8   : > { %v2270_v12 = vpop.permute.xlu0 %2269  ;;  %v4321_v48 = vpop.permute.xlu1 %2238 }
 0x3e9   : > { %v2248_v63 = vsel %vm2240_vm15, %v4321_v48, %v4281_v15  ;;  %v2244_v42 = vsel %vm2240_vm15, %v4281_v15, %v4321_v48 }
 0x3ea   : > { %v2260_v62 = vsel %vm2201_vm14, %v2248_v63, 0.0  ;;  %v2267_v45 = vadd.f32 %v2244_v42, %v2222_v28 }
 0x3eb   : > { %v2268_v60 = vadd.f32 %v2260_v62, %v2223_v16 }
 0x3ec   : > { %v2278_v24 = vpop.permute.xlu0 %2277  ;;  %v2272_v58 = vpop.permute.xlu1 %2271 }
 0x3ed   : > { %v2286_v22 = vsel %vm2285_vm0, %v2270_v12, %v2278_v24  ;;  %v2290_v47 = vsel %vm2285_vm0, %v2278_v24, %v2270_v12  ;;  %v2265_v12 = vadd.f32 %v2243_v56, %v2220_v5 }
 0x3ee   : > { %v2300_v52 = vsel %vm4155_vm8, %v2286_v22, 0.0  ;;  %v2301_v50 = vsel %vm4353_vm2, %v2290_v47, 0.0 }
 0x3ef   : > { %v2308_v14 = vadd.f32 %v2300_v52, %v2261_v2  ;;  %v2309_v10 = vadd.f32 %v2301_v50, %v2262_v18 }
 0x3f0   : > { %v2274_v27 = vpop.permute.xlu0 %2273  ;;  %v2280_v19 = vpop.permute.xlu1 %2279 }
 0x3f1   : > { %2316 = vst [vmem:[%s4378_s18] sm:$0xff] %v2308_v14  ;;  %2317 = vst [vmem:[%s4378_s18 + $0x8] sm:$0xff] %v2309_v10  ;;  %v2287_v29 = vsel %vm2285_vm0, %v2272_v58, %v2280_v19  ;;  %v2291_v36 = vsel %vm2285_vm0, %v2280_v19, %v2272_v58 }
 0x3f2   : > { %v2302_v9 = vsel %vm4155_vm8, %v2287_v29, 0.0  ;;  %v2303_v51 = vsel %vm4353_vm2, %v2291_v36, 0.0 }
 0x3f3   : > { %v2310_v13 = vadd.f32 %v2302_v9, %v2263_v41  ;;  %v2311_v54 = vadd.f32 %v2303_v51, %v2264_v21 }
 0x3f4   : > { %v2282_v49 = vpop.permute.xlu0 %2281  ;;  %v2276_v32 = vpop.permute.xlu1 %2275 }
 0x3f5   : > { %2318 = vst [vmem:[%s4378_s18 + $0x10] sm:$0xff] %v2310_v13  ;;  %2319 = vst [vmem:[%s4378_s18 + $0x18] sm:$0xff] %v2311_v54  ;;  %v2288_v37 = vsel %vm2285_vm0, %v2274_v27, %v2282_v49  ;;  %v2292_v40 = vsel %vm2285_vm0, %v2282_v49, %v2274_v27 }
 0x3f6   : > { %v2304_v25 = vsel %vm4155_vm8, %v2288_v37, 0.0  ;;  %v2305_v1 = vsel %vm4353_vm2, %v2292_v40, 0.0 }
 0x3f7   : > { %v2312_v23 = vadd.f32 %v2304_v25, %v2265_v12  ;;  %v2313_v31 = vadd.f32 %v2305_v1, %v2266_v8 }
 0x3f8   : > { %v2284_v34 = vpop.permute.xlu1 %2283 }
 0x3f9   : > { %2320 = vst [vmem:[%s4378_s18 + $0x20] sm:$0xff] %v2312_v23  ;;  %2321 = vst [vmem:[%s4378_s18 + $0x28] sm:$0xff] %v2313_v31  ;;  %v2289_v4 = vsel %vm2285_vm0, %v2276_v32, %v2284_v34  ;;  %v2293_v15 = vsel %vm2285_vm0, %v2284_v34, %v2276_v32 }
 0x3fa   : > { %v2306_v48 = vsel %vm4155_vm8, %v2289_v4, 0.0  ;;  %v2307_v61 = vsel %vm4353_vm2, %v2293_v15, 0.0 }
 0x3fb   : > { %v2314_v55 = vadd.f32 %v2306_v48, %v2267_v45  ;;  %v2315_v44 = vadd.f32 %v2307_v61, %v2268_v60 }
 0x3fd   : > { %2322 = vst [vmem:[%s4378_s18 + $0x30] sm:$0xff] %v2314_v55  ;;  %2323 = vst [vmem:[%s4378_s18 + $0x38] sm:$0xff] %v2315_v44 }
 0x3fe PF: > { %s17_s24 = sadd.s32 1, %s2685_s24  }
 0x3ff   : > { %p14_p4 = scmp.ge.s32.totalorder %s17_s24, 4  }
 0x401   :  { %16 = sbr.rel (!%p14_p4) target bundleno = 1 (0x1), region = 78 }

</bundles_post_ra>
